<compile_context>
chip_gen: v5e
topology: v5e:2x2
jax: 0.10.0
libtpu: 0.0.40
codegen_flags: <defaults>
</compile_context>

<pallas_src>
import functools

import jax
import jax.numpy as jnp
from jax.experimental import pallas as pl
from jax.experimental.pallas import tpu as pltpu

NEG_SLOPE = 0.01          # torch.nn.LeakyReLU default
D_IN = 784                # input features (multiple of 8; intentionally NOT padded to 896/1024)
H = 200                   # logical hidden width
H_PAD = 256               # padded hidden width (multiple of 128)
D_OUT = 10                # logical output width
O_PAD = 128               # padded output width (one full lane group -> unmasked vst)


def _round_up(v, m):
    return ((v + m - 1) // m) * m


def _leaky_relu(x):
    return jnp.where(x >= 0, x, NEG_SLOPE * x)


def mlp_kernel(x_ref, w1_ref, b1_ref, w2_ref, b2_ref, w3_ref, b3_ref, o_ref):
    # x arrives as float32; cast to the matmul dtype on the VPU (hidden under the MXU work).
    x = x_ref[...].astype(w1_ref.dtype)
    # Layer 1: (bt, 784) @ (784, 256), f32 accumulation, + bias, LeakyReLU.
    h = jnp.dot(x, w1_ref[...], preferred_element_type=jnp.float32) + b1_ref[...]
    h = _leaky_relu(h)
    # Layer 2: (bt, 256) @ (256, 256).
    h = jnp.dot(h.astype(w2_ref.dtype), w2_ref[...],
                preferred_element_type=jnp.float32) + b2_ref[...]
    h = _leaky_relu(h)
    # Layer 3: (bt, 256) @ (256, 128).
    h = jnp.dot(h.astype(w3_ref.dtype), w3_ref[...],
                preferred_element_type=jnp.float32) + b3_ref[...]
    o_ref[...] = _leaky_relu(h).astype(o_ref.dtype)


def _choose_grid(B, batch_tile):
    """Pick (rows_per_tile, grid_steps, padded_batch).

    Guarantees >= 2 grid steps and an even step count (v7x: both TensorCores busy, no idle
    trailing step) with tiles that are multiples of 8 rows and never exceed batch_tile.
    """
    batch_tile = max(8, _round_up(int(batch_tile), 8))
    steps = max(2, -(-B // batch_tile))          # ceil-div, at least 2
    if steps % 2:
        steps += 1                               # even number of grid steps
    bt = max(8, _round_up(-(-B // steps), 8))    # rows per step, multiple of 8, <= batch_tile
    return bt, steps, bt * steps


@functools.partial(jax.jit,
                   static_argnames=("batch_tile", "compute_dtype", "out_dtype", "padded_output"))
def mlp_forward(x, params, *, batch_tile=2048, compute_dtype=jnp.bfloat16,
                out_dtype=None, padded_output=False):
    """x: (B, 784) float32.  params: w1,b1,w2,b2,w3,b3 with weights (in, out), biases (1, out)."""
    B, d_in = x.shape
    assert d_in == D_IN
    if out_dtype is None:
        out_dtype = compute_dtype              # bf16 writeback by default; f32 if compute is f32

    bt, steps, b_pad = _choose_grid(B, batch_tile)
    if b_pad != B:                             # minimal row padding; padded rows sliced off below
        x = jnp.pad(x, ((0, b_pad - B), (0, 0)))

    # Zero-pad weights/biases to lane-aligned widths (numerically exact: LeakyReLU(0) = 0).
    w1 = jnp.pad(params["w1"], ((0, 0), (0, H_PAD - H))).astype(compute_dtype)            # (784,256)
    w2 = jnp.pad(params["w2"], ((0, H_PAD - H), (0, H_PAD - H))).astype(compute_dtype)    # (256,256)
    w3 = jnp.pad(params["w3"], ((0, H_PAD - H), (0, O_PAD - D_OUT))).astype(compute_dtype)  # (256,128)
    b1 = jnp.pad(params["b1"], ((0, 0), (0, H_PAD - H)))                                  # (1,256) f32
    b2 = jnp.pad(params["b2"], ((0, 0), (0, H_PAD - H)))                                  # (1,256) f32
    b3 = jnp.pad(params["b3"], ((0, 0), (0, O_PAD - D_OUT)))                              # (1,128) f32

    full = lambda i: (0, 0)                    # constant index_map -> weights stay VMEM-resident

    itemsize_c = jnp.dtype(compute_dtype).itemsize
    itemsize_o = jnp.dtype(out_dtype).itemsize
    w_elems = D_IN * H_PAD + H_PAD * H_PAD + H_PAD * O_PAD
    b_elems = 2 * H_PAD + O_PAD

    # VMEM budget per grid step (x/out double-buffered, weights resident, activation headroom).
    buf_bytes = (2 * (bt * D_IN * 4 + bt * O_PAD * itemsize_o)
                 + 2 * (w_elems * itemsize_c + b_elems * 4)
                 + 2 * bt * H_PAD * 4)
    vmem_limit = int(min(48 * 2**20, max(32 * 2**20, buf_bytes * 5 // 4)))

    cost = pl.CostEstimate(
        flops=2 * b_pad * w_elems,
        transcendentals=0,
        bytes_accessed=(b_pad * D_IN * 4          # x read as f32 (cast happens inside the kernel)
                        + w_elems * itemsize_c    # weights
                        + b_elems * 4             # biases (f32)
                        + b_pad * O_PAD * itemsize_o),
    )

    out = pl.pallas_call(
        mlp_kernel,
        out_shape=jax.ShapeDtypeStruct((b_pad, O_PAD), out_dtype),
        grid=(steps,),
        in_specs=[
            pl.BlockSpec((bt, D_IN), lambda i: (i, 0)),   # x tile marches along the batch
            pl.BlockSpec((D_IN, H_PAD), full),            # w1 (resident)
            pl.BlockSpec((1, H_PAD), full),               # b1
            pl.BlockSpec((H_PAD, H_PAD), full),           # w2
            pl.BlockSpec((1, H_PAD), full),               # b2
            pl.BlockSpec((H_PAD, O_PAD), full),           # w3
            pl.BlockSpec((1, O_PAD), full),               # b3
        ],
        out_specs=pl.BlockSpec((bt, O_PAD), lambda i: (i, 0)),
        compiler_params=pltpu.CompilerParams(
            dimension_semantics=("parallel",),            # batch axis shards across TCs (v7x)
            vmem_limit_bytes=vmem_limit,
        ),
        cost_estimate=cost,
    )(x, w1, b1, w2, b2, w3, b3)

    if padded_output:
        # Fused consumers can take the lane-padded result and slice/fuse the 10 real columns
        # themselves, avoiding an extra HBM pass over the output.
        return out if b_pad == B else out[:B]
    return out[:B, :D_OUT]


def init_params(key):
    """Deterministic init mimicking torch.nn.Linear defaults (uniform +/- 1/sqrt(fan_in))."""
    dims = [(D_IN, H), (H, H), (H, D_OUT)]
    params = {}
    for idx, (fan_in, fan_out) in enumerate(dims, start=1):
        key, kw, kb = jax.random.split(key, 3)
        bound = 1.0 / jnp.sqrt(fan_in)
        params[f"w{idx}"] = jax.random.uniform(
            kw, (fan_in, fan_out), jnp.float32, minval=-bound, maxval=bound)
        params[f"b{idx}"] = jax.random.uniform(
            kb, (1, fan_out), jnp.float32, minval=-bound, maxval=bound)
    return params


def mlp_reference(x, params):
    h = x @ params["w1"] + params["b1"]
    h = jnp.where(h >= 0, h, NEG_SLOPE * h)
    h = h @ params["w2"] + params["b2"]
    h = jnp.where(h >= 0, h, NEG_SLOPE * h)
    h = h @ params["w3"] + params["b3"]
    return jnp.where(h >= 0, h, NEG_SLOPE * h)


if __name__ == "__main__":
    key = jax.random.PRNGKey(0)
    key, kx = jax.random.split(key)

    B = 64                                     # small demo batch; wrapper picks a (32-row x 2) grid
    x = jax.random.normal(kx, (B, D_IN), jnp.float32)
    params = init_params(key)
    ref = mlp_reference(x, params)

    # Production default path: bf16 MXU inputs + bf16 writeback, f32 accumulation inside.
    out_bf16 = mlp_forward(x, params)
    out_bf16 = jax.block_until_ready(out_bf16)
    assert out_bf16.shape == (B, D_OUT)
    assert out_bf16.dtype == jnp.bfloat16
    assert jnp.allclose(out_bf16.astype(jnp.float32), ref, atol=7.5e-2, rtol=7.5e-2), \
        "bf16 Pallas output mismatch"

    # f32 compute/output path (sanity check of the fused/padded structure itself).
    out_f32 = mlp_forward(x, params, compute_dtype=jnp.float32)
    out_f32 = jax.block_until_ready(out_f32)
    assert out_f32.shape == (B, D_OUT)
    assert out_f32.dtype == jnp.float32
    assert jnp.allclose(out_f32, ref, atol=5e-2, rtol=5e-2), "f32 Pallas output mismatch"

    print("KERNEL_OK")
</pallas_src>

<mosaic_0001>
module attributes {stable_mosaic.version = 11 : i64} {
  func.func @mlp_kernel(%arg0: i32, %arg1: memref<32x784xf32, #tpu.memory_space<vmem>>, %arg2: memref<784x256xbf16, #tpu.memory_space<vmem>>, %arg3: memref<1x256xf32, #tpu.memory_space<vmem>>, %arg4: memref<256x256xbf16, #tpu.memory_space<vmem>>, %arg5: memref<1x256xf32, #tpu.memory_space<vmem>>, %arg6: memref<256x128xbf16, #tpu.memory_space<vmem>>, %arg7: memref<1x128xf32, #tpu.memory_space<vmem>>, %arg8: memref<32x128xbf16, #tpu.memory_space<vmem>>) attributes {dimension_semantics = [#tpu.dimension_semantics<parallel>], iteration_bounds = array<i64: 2>, scalar_prefetch = 0 : i64, scratch_operands = 0 : i64, tpu.core_type = #tpu.core_type<tc>, window_params = [{transform_indices = @transform_0, window_bounds = array<i64: 32, 784>}, {pipeline_mode = #tpu.pipeline_mode<synchronous>, transform_indices = @transform_1, window_bounds = array<i64: 784, 256>}, {pipeline_mode = #tpu.pipeline_mode<synchronous>, transform_indices = @transform_2, window_bounds = array<i64: 1, 256>}, {pipeline_mode = #tpu.pipeline_mode<synchronous>, transform_indices = @transform_3, window_bounds = array<i64: 256, 256>}, {pipeline_mode = #tpu.pipeline_mode<synchronous>, transform_indices = @transform_4, window_bounds = array<i64: 1, 256>}, {pipeline_mode = #tpu.pipeline_mode<synchronous>, transform_indices = @transform_5, window_bounds = array<i64: 256, 128>}, {pipeline_mode = #tpu.pipeline_mode<synchronous>, transform_indices = @transform_6, window_bounds = array<i64: 1, 128>}, {transform_indices = @transform_7, window_bounds = array<i64: 32, 128>}]} {
    %c0 = arith.constant 0 : index
    %c0_0 = arith.constant 0 : index
    %0 = vector.load %arg1[%c0, %c0_0] : memref<32x784xf32, #tpu.memory_space<vmem>>, vector<32x784xf32>
    %1 = arith.truncf %0 : vector<32x784xf32> to vector<32x784xbf16>
    %c0_1 = arith.constant 0 : index
    %c0_2 = arith.constant 0 : index
    %2 = vector.load %arg2[%c0_1, %c0_2] : memref<784x256xbf16, #tpu.memory_space<vmem>>, vector<784x256xbf16>
    %cst = arith.constant dense<0.000000e+00> : vector<32x256xf32>
    %3 = tpu.matmul %1, %2, %cst {dimension_numbers = #tpu.dot_dimension_numbers<[1], [0], [0], [1], [0, 0, 1, 1], [], []>} : vector<32x784xbf16>, vector<784x256xbf16>, vector<32x256xf32> -> vector<32x256xf32>
    %c0_3 = arith.constant 0 : index
    %c0_4 = arith.constant 0 : index
    %4 = vector.load %arg3[%c0_3, %c0_4] : memref<1x256xf32, #tpu.memory_space<vmem>>, vector<1x256xf32>
    %5 = vector.broadcast %4 : vector<1x256xf32> to vector<32x256xf32>
    %6 = arith.addf %3, %5 : vector<32x256xf32>
    %cst_5 = arith.constant 0.000000e+00 : f32
    %7 = vector.broadcast %cst_5 : f32 to vector<32x256xf32>
    %8 = arith.cmpf oge, %6, %7 : vector<32x256xf32>
    %cst_6 = arith.constant 0.00999999977 : f32
    %9 = vector.broadcast %cst_6 : f32 to vector<32x256xf32>
    %10 = arith.mulf %9, %6 : vector<32x256xf32>
    %11 = arith.select %8, %6, %10 : vector<32x256xi1>, vector<32x256xf32>
    %12 = arith.truncf %11 : vector<32x256xf32> to vector<32x256xbf16>
    %c0_7 = arith.constant 0 : index
    %c0_8 = arith.constant 0 : index
    %13 = vector.load %arg4[%c0_7, %c0_8] : memref<256x256xbf16, #tpu.memory_space<vmem>>, vector<256x256xbf16>
    %cst_9 = arith.constant dense<0.000000e+00> : vector<32x256xf32>
    %14 = tpu.matmul %12, %13, %cst_9 {dimension_numbers = #tpu.dot_dimension_numbers<[1], [0], [0], [1], [0, 0, 1, 1], [], []>} : vector<32x256xbf16>, vector<256x256xbf16>, vector<32x256xf32> -> vector<32x256xf32>
    %c0_10 = arith.constant 0 : index
    %c0_11 = arith.constant 0 : index
    %15 = vector.load %arg5[%c0_10, %c0_11] : memref<1x256xf32, #tpu.memory_space<vmem>>, vector<1x256xf32>
    %16 = vector.broadcast %15 : vector<1x256xf32> to vector<32x256xf32>
    %17 = arith.addf %14, %16 : vector<32x256xf32>
    %cst_12 = arith.constant 0.000000e+00 : f32
    %18 = vector.broadcast %cst_12 : f32 to vector<32x256xf32>
    %19 = arith.cmpf oge, %17, %18 : vector<32x256xf32>
    %cst_13 = arith.constant 0.00999999977 : f32
    %20 = vector.broadcast %cst_13 : f32 to vector<32x256xf32>
    %21 = arith.mulf %20, %17 : vector<32x256xf32>
    %22 = arith.select %19, %17, %21 : vector<32x256xi1>, vector<32x256xf32>
    %23 = arith.truncf %22 : vector<32x256xf32> to vector<32x256xbf16>
    %c0_14 = arith.constant 0 : index
    %c0_15 = arith.constant 0 : index
    %24 = vector.load %arg6[%c0_14, %c0_15] : memref<256x128xbf16, #tpu.memory_space<vmem>>, vector<256x128xbf16>
    %cst_16 = arith.constant dense<0.000000e+00> : vector<32x128xf32>
    %25 = tpu.matmul %23, %24, %cst_16 {dimension_numbers = #tpu.dot_dimension_numbers<[1], [0], [0], [1], [0, 0, 1, 1], [], []>} : vector<32x256xbf16>, vector<256x128xbf16>, vector<32x128xf32> -> vector<32x128xf32>
    %c0_17 = arith.constant 0 : index
    %c0_18 = arith.constant 0 : index
    %26 = vector.load %arg7[%c0_17, %c0_18] : memref<1x128xf32, #tpu.memory_space<vmem>>, vector<1x128xf32>
    %27 = vector.broadcast %26 : vector<1x128xf32> to vector<32x128xf32>
    %28 = arith.addf %25, %27 : vector<32x128xf32>
    %cst_19 = arith.constant 0.000000e+00 : f32
    %29 = vector.broadcast %cst_19 : f32 to vector<32x128xf32>
    %30 = arith.cmpf oge, %28, %29 : vector<32x128xf32>
    %cst_20 = arith.constant 0.00999999977 : f32
    %31 = vector.broadcast %cst_20 : f32 to vector<32x128xf32>
    %32 = arith.mulf %31, %28 : vector<32x128xf32>
    %33 = arith.select %30, %28, %32 : vector<32x128xi1>, vector<32x128xf32>
    %34 = arith.truncf %33 : vector<32x128xf32> to vector<32x128xbf16>
    %c0_21 = arith.constant 0 : index
    %c0_22 = arith.constant 0 : index
    %35 = vector.load %arg8[%c0_21, %c0_22] : memref<32x128xbf16, #tpu.memory_space<vmem>>, vector<32x128xbf16>
    tpu.vector_store %arg8[%c0_21, %c0_22], %34 {strides = array<i32>} : memref<32x128xbf16, #tpu.memory_space<vmem>>, vector<32x128xbf16>,
    return
  }
  func.func @transform_0(%arg0: i32) -> (i32, i32) {
    %c0_i32 = arith.constant 0 : i32
    %c0_i32_0 = arith.constant 0 : i32
    return %arg0, %c0_i32 : i32, i32
  }
  func.func @transform_1(%arg0: i32) -> (i32, i32) {
    %c0_i32 = arith.constant 0 : i32
    %c0_i32_0 = arith.constant 0 : i32
    %c0_i32_1 = arith.constant 0 : i32
    return %c0_i32, %c0_i32_0 : i32, i32
  }
  func.func @transform_2(%arg0: i32) -> (i32, i32) {
    %c0_i32 = arith.constant 0 : i32
    %c0_i32_0 = arith.constant 0 : i32
    %c0_i32_1 = arith.constant 0 : i32
    return %c0_i32, %c0_i32_0 : i32, i32
  }
  func.func @transform_3(%arg0: i32) -> (i32, i32) {
    %c0_i32 = arith.constant 0 : i32
    %c0_i32_0 = arith.constant 0 : i32
    %c0_i32_1 = arith.constant 0 : i32
    return %c0_i32, %c0_i32_0 : i32, i32
  }
  func.func @transform_4(%arg0: i32) -> (i32, i32) {
    %c0_i32 = arith.constant 0 : i32
    %c0_i32_0 = arith.constant 0 : i32
    %c0_i32_1 = arith.constant 0 : i32
    return %c0_i32, %c0_i32_0 : i32, i32
  }
  func.func @transform_5(%arg0: i32) -> (i32, i32) {
    %c0_i32 = arith.constant 0 : i32
    %c0_i32_0 = arith.constant 0 : i32
    %c0_i32_1 = arith.constant 0 : i32
    return %c0_i32, %c0_i32_0 : i32, i32
  }
  func.func @transform_6(%arg0: i32) -> (i32, i32) {
    %c0_i32 = arith.constant 0 : i32
    %c0_i32_0 = arith.constant 0 : i32
    %c0_i32_1 = arith.constant 0 : i32
    return %c0_i32, %c0_i32_0 : i32, i32
  }
  func.func @transform_7(%arg0: i32) -> (i32, i32) {
    %c0_i32 = arith.constant 0 : i32
    %c0_i32_0 = arith.constant 0 : i32
    return %arg0, %c0_i32 : i32, i32
  }
}

</mosaic_0001>

<bundles_post_ra>
// kernel: mlp_forward.1
= control target key start
LH: loop header
LB: loop body
LE: loop exit
PB: predicated region body
PF: predicated region fallthrough
CT: control target
= control target key end

     0   :  { %s2585_s24 = smov 0   ;;  %s3546_s0 = inlined_call_operand.vmem [shape: f32[64,784], index: 0, kind: input, shape index: {}]   ;;  %s3547_s1 = inlined_call_operand.vmem [shape: bf16[784,256], index: 1, kind: input, shape index: {}]   ;;  %s3548_s2 = inlined_call_operand.vmem [shape: f32[1,256], index: 2, kind: input, shape index: {}]   ;;  %s3549_s3 = inlined_call_operand.vmem [shape: bf16[256,256], index: 3, kind: input, shape index: {}]   ;;  %s3550_s4 = inlined_call_operand.vmem [shape: f32[1,256], index: 4, kind: input, shape index: {}]   ;;  %s3551_s5 = inlined_call_operand.vmem [shape: bf16[256,128], index: 5, kind: input, shape index: {}]   ;;  %s3552_s6 = inlined_call_operand.vmem [shape: f32[1,128], index: 6, kind: input, shape index: {}]   ;;  %s3553_s7 = inlined_call_operand.vmem [shape: bf16[64,128], index: 7, kind: output, shape index: {}]  }
   0x1 LB: > { %s1771_s25 = sadd.s32 4294967295, %s2543_s24   ;;  %p1775_p0 = scmp.ge.s32.totalorder %s2543_s24, 1  ;;  %s2543_s24 = sphi %s2585_s24, %s17_s24  }
   0x2   : > { %p239_p1 = scmp.lt.s32.totalorder %s2543_s24, 3 }
   0x4   : > { %p240_p2 = pnand %p1775_p0, %p239_p1 }
   0x5   : > { %s1776_s29 = sshll.u32 (!%p240_p2), %s1771_s25, 2 }
   0x6   : > { %243 = sbr.rel (%p240_p2) target bundleno = 597 (0x255), region = 48  ;;  %p273_p3 = scmp.lt.s32.totalorder (!%p240_p2), %s1776_s29, 7 }
   0xb   : > { %v1838_v0 = vld [vmem:[%s3547_s1 + $0x70] sm:$0xf]  ;;  %v2385_v1 = vld [vmem:[%s3547_s1 + $0x74] sm:$0xf0]  ;;  %v1830_v11 = vld [vmem:[%s3547_s1 + $0x60] sm:$0xf] }
   0xc   : > { %v1902_v2 = vld [vmem:[%s3547_s1 + $0xf0] sm:$0xf]  ;;  %v1839_v3 = vor.u32 %v2385_v1, %v1838_v0  ;;  %v2401_v4 = vld [vmem:[%s3547_s1 + $0xf4] sm:$0xf0]  ;;  %v2383_v13 = vld [vmem:[%s3547_s1 + $0x64] sm:$0xf0] }
   0xd   : > { %v1966_v5 = vld [vmem:[%s3547_s1 + $0x170] sm:$0xf]  ;;  %v2417_v6 = vld [vmem:[%s3547_s1 + $0x174] sm:$0xf0]  ;;  %v1903_v7 = vor.u32 %v2401_v4, %v1902_v2  ;;  %v1894_v14 = vld [vmem:[%s3547_s1 + $0xe0] sm:$0xf]  ;;  %v1831_v16 = vor.u32 %v2383_v13, %v1830_v11 }
   0xe   : > { %v1967_v8 = vor.u32 %v2417_v6, %v1966_v5  ;;  %v2030_v9 = vld [vmem:[%s3547_s1 + $0x1f0] sm:$0xf]  ;;  %v2433_v10 = vld [vmem:[%s3547_s1 + $0x1f4] sm:$0xf0]  ;;  %929 = vmatpush.bf16.msra.mxu0 %v1839_v3  ;;  %v2399_v15 = vld [vmem:[%s3547_s1 + $0xe4] sm:$0xf0] }
   0xf   : > { %v2031_v12 = vor.u32 %v2433_v10, %v2030_v9  ;;  %948 = vmatpush.bf16.msra.mxu1 %v1903_v7  ;;  %v1895_v17 = vor.u32 %v2399_v15, %v1894_v14  ;;  %v1958_v18 = vld [vmem:[%s3547_s1 + $0x160] sm:$0xf]  ;;  %v2415_v19 = vld [vmem:[%s3547_s1 + $0x164] sm:$0xf0]  ;;  %v1822_v23 = vld [vmem:[%s3547_s1 + $0x50] sm:$0xf] }
  0x10   : > { %967 = vmatpush.bf16.msra.mxu2 %v1967_v8  ;;  %v2022_v20 = vld [vmem:[%s3547_s1 + $0x1e0] sm:$0xf]  ;;  %v1959_v21 = vor.u32 %v2415_v19, %v1958_v18  ;;  %v2431_v22 = vld [vmem:[%s3547_s1 + $0x1e4] sm:$0xf0]  ;;  %v2381_v24 = vld [vmem:[%s3547_s1 + $0x54] sm:$0xf0] }
  0x11   : > { %986 = vmatpush.bf16.msra.mxu3 %v2031_v12  ;;  %v2023_v25 = vor.u32 %v2431_v22, %v2022_v20  ;;  %v1886_v26 = vld [vmem:[%s3547_s1 + $0xd0] sm:$0xf]  ;;  %v2397_v27 = vld [vmem:[%s3547_s1 + $0xd4] sm:$0xf0]  ;;  %v1823_v29 = vor.u32 %v2381_v24, %v1822_v23  ;;  %v1814_v35 = vld [vmem:[%s3547_s1 + $0x40] sm:$0xf] }
  0x12   : > { %v1950_v28 = vld [vmem:[%s3547_s1 + $0x150] sm:$0xf]  ;;  %930 = vmatpush.bf16.msra.mxu0 %v1831_v16  ;;  %v2413_v30 = vld [vmem:[%s3547_s1 + $0x154] sm:$0xf0]  ;;  %v1887_v33 = vor.u32 %v2397_v27, %v1886_v26  ;;  %v2379_v36 = vld [vmem:[%s3547_s1 + $0x44] sm:$0xf0] }
  0x13   : > { %v2014_v31 = vld [vmem:[%s3547_s1 + $0x1d0] sm:$0xf]  ;;  %v2429_v32 = vld [vmem:[%s3547_s1 + $0x1d4] sm:$0xf0]  ;;  %949 = vmatpush.bf16.msra.mxu1 %v1895_v17  ;;  %v1951_v34 = vor.u32 %v2413_v30, %v1950_v28  ;;  %v1878_v37 = vld [vmem:[%s3547_s1 + $0xc0] sm:$0xf]  ;;  %v1815_v44 = vor.u32 %v2379_v36, %v1814_v35 }
  0x14   : > { %968 = vmatpush.bf16.msra.mxu2 %v1959_v21  ;;  %v2015_v38 = vor.u32 %v2429_v32, %v2014_v31  ;;  %v2395_v39 = vld [vmem:[%s3547_s1 + $0xc4] sm:$0xf0]  ;;  %v1942_v40 = vld [vmem:[%s3547_s1 + $0x140] sm:$0xf]  ;;  %v1806_v47 = vld [vmem:[%s3547_s1 + $0x30] sm:$0xf] }
  0x15   : > { %987 = vmatpush.bf16.msra.mxu3 %v2023_v25  ;;  %v2411_v41 = vld [vmem:[%s3547_s1 + $0x144] sm:$0xf0]  ;;  %v2006_v42 = vld [vmem:[%s3547_s1 + $0x1c0] sm:$0xf]  ;;  %v1879_v45 = vor.u32 %v2395_v39, %v1878_v37  ;;  %v2377_v48 = vld [vmem:[%s3547_s1 + $0x34] sm:$0xf0] }
  0x16   : > { %v2427_v43 = vld [vmem:[%s3547_s1 + $0x1c4] sm:$0xf0]  ;;  %931 = vmatpush.bf16.msra.mxu0 %v1823_v29  ;;  %v1943_v46 = vor.u32 %v2411_v41, %v1942_v40  ;;  %v1870_v49 = vld [vmem:[%s3547_s1 + $0xb0] sm:$0xf]  ;;  %v2393_v51 = vld [vmem:[%s3547_s1 + $0xb4] sm:$0xf0]  ;;  %v1807_v56 = vor.u32 %v2377_v48, %v1806_v47 }
  0x17   : > { %950 = vmatpush.bf16.msra.mxu1 %v1887_v33  ;;  %v2007_v50 = vor.u32 %v2427_v43, %v2006_v42  ;;  %v1934_v52 = vld [vmem:[%s3547_s1 + $0x130] sm:$0xf]  ;;  %v2409_v53 = vld [vmem:[%s3547_s1 + $0x134] sm:$0xf0]  ;;  %v1871_v57 = vor.u32 %v2393_v51, %v1870_v49  ;;  %v1798_v59 = vld [vmem:[%s3547_s1 + $0x20] sm:$0xf] }
  0x18   : > { %969 = vmatpush.bf16.msra.mxu2 %v1951_v34  ;;  %v1998_v54 = vld [vmem:[%s3547_s1 + $0x1b0] sm:$0xf]  ;;  %v2425_v55 = vld [vmem:[%s3547_s1 + $0x1b4] sm:$0xf0]  ;;  %v1935_v58 = vor.u32 %v2409_v53, %v1934_v52  ;;  %v2375_v60 = vld [vmem:[%s3547_s1 + $0x24] sm:$0xf0] }
  0x19   : > { %988 = vmatpush.bf16.msra.mxu3 %v2015_v38  ;;  %v1862_v61 = vld [vmem:[%s3547_s1 + $0xa0] sm:$0xf]  ;;  %v1999_v62 = vor.u32 %v2425_v55, %v1998_v54  ;;  %v2391_v63 = vld [vmem:[%s3547_s1 + $0xa4] sm:$0xf0]  ;;  %v1799_v4 = vor.u32 %v2375_v60, %v1798_v59  ;;  %v1790_v5 = vld [vmem:[%s3547_s1 + $0x10] sm:$0xf] }
  0x1a   : > { %932 = vmatpush.bf16.msra.mxu0 %v1815_v44  ;;  %v1926_v0 = vld [vmem:[%s3547_s1 + $0x120] sm:$0xf]  ;;  %v2407_v1 = vld [vmem:[%s3547_s1 + $0x124] sm:$0xf0]  ;;  %v1863_v6 = vor.u32 %v2391_v63, %v1862_v61  ;;  %v2373_v8 = vld [vmem:[%s3547_s1 + $0x14] sm:$0xf0] }
  0x1b   : > { %951 = vmatpush.bf16.msra.mxu1 %v1879_v45  ;;  %v1990_v2 = vld [vmem:[%s3547_s1 + $0x1a0] sm:$0xf]  ;;  %v2423_v3 = vld [vmem:[%s3547_s1 + $0x1a4] sm:$0xf0]  ;;  %v1927_v7 = vor.u32 %v2407_v1, %v1926_v0  ;;  %v1854_v9 = vld [vmem:[%s3547_s1 + $0x90] sm:$0xf]  ;;  %v1791_v16 = vor.u32 %v2373_v8, %v1790_v5 }
  0x1c   : > { %970 = vmatpush.bf16.msra.mxu2 %v1943_v46  ;;  %v2389_v10 = vld [vmem:[%s3547_s1 + $0x94] sm:$0xf0]  ;;  %v1991_v11 = vor.u32 %v2423_v3, %v1990_v2  ;;  %v1918_v12 = vld [vmem:[%s3547_s1 + $0x110] sm:$0xf]  ;;  %v1782_v17 = vld [vmem:[%s3547_s1] sm:$0xf] }
  0x1d   : > { %989 = vmatpush.bf16.msra.mxu3 %v2007_v50  ;;  %v2405_v13 = vld [vmem:[%s3547_s1 + $0x114] sm:$0xf0]  ;;  %v1982_v14 = vld [vmem:[%s3547_s1 + $0x190] sm:$0xf]  ;;  %v2371_v18 = vld [vmem:[%s3547_s1 + $0x4] sm:$0xf0]  ;;  %v1855_v20 = vor.u32 %v2389_v10, %v1854_v9 }
  0x1e   : > { %933 = vmatpush.bf16.msra.mxu0 %v1807_v56  ;;  %v2421_v15 = vld [vmem:[%s3547_s1 + $0x194] sm:$0xf0]  ;;  %v1846_v19 = vld [vmem:[%s3547_s1 + $0x80] sm:$0xf]  ;;  %v1919_v21 = vor.u32 %v2405_v13, %v1918_v12  ;;  %v2387_v22 = vld [vmem:[%s3547_s1 + $0x84] sm:$0xf0]  ;;  %v1783_v30 = vor.u32 %v2371_v18, %v1782_v17 }
  0x1f   : > { %952 = vmatpush.bf16.msra.mxu1 %v1871_v57  ;;  %v1910_v23 = vld [vmem:[%s3547_s1 + $0x100] sm:$0xf]  ;;  %s3555_s29 = smov (!%p273_p3, %s1776_s29), 7  ;;  %v1983_v24 = vor.u32 %v2421_v15, %v1982_v14  ;;  %v2403_v25 = vld [vmem:[%s3547_s1 + $0x104] sm:$0xf0]  ;;  %v1847_v33 = vor.u32 %v2387_v22, %v1846_v19  ;;  %vm922_vm0 = vcmask 130048  }
  0x20   : > { %971 = vmatpush.bf16.msra.mxu2 %v1935_v58  ;;  %v1974_v26 = vld [vmem:[%s3547_s1 + $0x180] sm:$0xf]  ;;  %v2419_v27 = vld [vmem:[%s3547_s1 + $0x184] sm:$0xf0]  ;;  %s2527_s28 = smul.u32 56, %s3555_s29  ;;  %v1911_v34 = vor.u32 %v2403_v25, %v1910_v23  ;;  %s1779_s30 = sshll.u32 %s3555_s29, 2 }
  0x21   : > { %990 = vmatpush.bf16.msra.mxu3 %v1999_v62  ;;  %v2094_v28 = vld [vmem:[%s3547_s1 + $0x270] sm:$0xf]  ;;  %v2449_v29 = vld [vmem:[%s3547_s1 + $0x274] sm:$0xf0]  ;;  %v2384_v35 = vld [vmem:[%s3547_s1 + $0x74] sm:$0xf]  ;;  %v1975_v39 = vor.u32 %v2419_v27, %v1974_v26  ;;  %s283_s10 = scalar_lea.vmem %s3553_s7, %s1779_s30 }
  0x22   : > { %934 = vmatpush.bf16.msra.mxu0 %v1799_v4  ;;  %v2158_v31 = vld [vmem:[%s3547_s1 + $0x2f0] sm:$0xf]  ;;  %v2465_v32 = vld [vmem:[%s3547_s1 + $0x2f4] sm:$0xf0]  ;;  %s2805_s16 = scalar_lea.vmem %s3546_s0, %s2527_s28  ;;  %v1840_v36 = vld [vmem:[%s3547_s1 + $0x78] sm:$0xf0]  ;;  %v2095_v43 = vor.u32 %v2449_v29, %v2094_v28 }
  0x23   : > { %953 = vmatpush.bf16.msra.mxu1 %v1863_v6  ;;  %v2086_v37 = vld [vmem:[%s3547_s1 + $0x260] sm:$0xf]  ;;  %v2447_v38 = vld [vmem:[%s3547_s1 + $0x264] sm:$0xf0]  ;;  %v293_v41 = vld [vmem:[%s2805_s16 + $0x38] sm:$0xff]  ;;  %v2159_v49 = vor.u32 %v2465_v32, %v2158_v31  ;;  %v1843_v56 = vor.u32 %v2384_v35, %v1840_v36 }
  0x24   : > { %972 = vmatpush.bf16.msra.mxu2 %v1927_v7  ;;  %v286_v40 = vld [vmem:[%s2805_s16] sm:$0xff]  ;;  %v287_v42 = vld [vmem:[%s2805_s16 + $0x8] sm:$0xff]  ;;  %v288_v47 = vld [vmem:[%s2805_s16 + $0x10] sm:$0xff]  ;;  %v2087_v57 = vor.u32 %v2447_v38, %v2086_v37 }
  0x25   : > { %991 = vmatpush.bf16.msra.mxu3 %v1991_v11  ;;  %v2150_v44 = vld [vmem:[%s3547_s1 + $0x2e0] sm:$0xf]  ;;  %v2825_v45 = vpack.c.bf16 %v293_v41, %v286_v40  ;;  %v295_v48 = vld [vmem:[%s2805_s16 + $0x48] sm:$0xff]  ;;  %v289_v52 = vld [vmem:[%s2805_s16 + $0x18] sm:$0xff] }
  0x26   : > { %935 = vmatpush.bf16.msra.mxu0 %v1791_v16  ;;  %v294_v46 = vld [vmem:[%s2805_s16 + $0x40] sm:$0xff]  ;;  %v2832_v51 = vpack.c.bf16 %v295_v48, %v288_v47  ;;  %v296_v53 = vld [vmem:[%s2805_s16 + $0x50] sm:$0xff]  ;;  %v2463_v54 = vld [vmem:[%s3547_s1 + $0x2e4] sm:$0xf0] }
  0x27   : > { %954 = vmatpush.bf16.msra.mxu1 %v1855_v20  ;;  %v2830_v50 = vpack.c.bf16 %v294_v46, %v287_v42  ;;  %v2839_v55 = vpack.c.bf16 %v296_v53, %v289_v52  ;;  %v2382_v58 = vld [vmem:[%s3547_s1 + $0x64] sm:$0xf]  ;;  %v2151_v59 = vor.u32 %v2463_v54, %v2150_v44  ;;  %v1832_v60 = vld [vmem:[%s3547_s1 + $0x68] sm:$0xf0]  ;;  %v2078_v61 = vld [vmem:[%s3547_s1 + $0x250] sm:$0xf] }
  0x28   : > { %973 = vmatpush.bf16.msra.mxu2 %v1919_v21  ;;  %v2445_v62 = vld [vmem:[%s3547_s1 + $0x254] sm:$0xf0]  ;;  %v2142_v63 = vld [vmem:[%s3547_s1 + $0x2d0] sm:$0xf]  ;;  %v1835_v1 = vor.u32 %v2382_v58, %v1832_v60  ;;  %v2380_v3 = vld [vmem:[%s3547_s1 + $0x54] sm:$0xf] }
  0x29   : > { %992 = vmatpush.bf16.msra.mxu3 %v1983_v24  ;;  %v2461_v0 = vld [vmem:[%s3547_s1 + $0x2d4] sm:$0xf0]  ;;  %v2079_v2 = vor.u32 %v2445_v62, %v2078_v61  ;;  %v1824_v4 = vld [vmem:[%s3547_s1 + $0x58] sm:$0xf0]  ;;  %v2070_v6 = vld [vmem:[%s3547_s1 + $0x240] sm:$0xf] }
  0x2a   : > { %936 = vmatpush.bf16.msra.mxu0 %v1783_v30  ;;  %v2143_v5 = vor.u32 %v2461_v0, %v2142_v63  ;;  %v2443_v7 = vld [vmem:[%s3547_s1 + $0x244] sm:$0xf0]  ;;  %v2134_v8 = vld [vmem:[%s3547_s1 + $0x2c0] sm:$0xf]  ;;  %v1827_v13 = vor.u32 %v2380_v3, %v1824_v4  ;;  %v2378_v15 = vld [vmem:[%s3547_s1 + $0x44] sm:$0xf] }
  0x2b   : > { %955 = vmatpush.bf16.msra.mxu1 %v1847_v33  ;;  %v2459_v9 = vld [vmem:[%s3547_s1 + $0x2c4] sm:$0xf0]  ;;  %v2166_v10 = vld [vmem:[%s3547_s1 + $0x300] sm:$0xf]  ;;  %v2071_v14 = vor.u32 %v2443_v7, %v2070_v6  ;;  %v1816_v16 = vld [vmem:[%s3547_s1 + $0x48] sm:$0xf0] }
  0x2c   : > { %974 = vmatpush.bf16.msra.mxu2 %v1911_v34  ;;  %v2467_v11 = vld [vmem:[%s3547_s1 + $0x304] sm:$0xf0]  ;;  %v300_v17 = vld [vmem:[%s2805_s16 + $0x70] sm:$0xff]  ;;  %v2135_v18 = vor.u32 %v2459_v9, %v2134_v8  ;;  %v2441_v21 = vld [vmem:[%s3547_s1 + $0x234] sm:$0xf0]  ;;  %v1819_v28 = vor.u32 %v2378_v15, %v1816_v16 }
  0x2d   : > { %993 = vmatpush.bf16.msra.mxu3 %v1975_v39  ;;  %937 = vmatmul.bf16.vlgmr.msra.gmra.mxu0 %v2825_v45  ;;  %v2167_v12 = vor.u32 %v2467_v11, %v2166_v10  ;;  %v307_v19 = vld [vmem:[%s2805_s16 + $0xa8] sm:$0xff]  ;;  %v2062_v20 = vld [vmem:[%s3547_s1 + $0x230] sm:$0xf]  ;;  %v301_v22 = vld [vmem:[%s2805_s16 + $0x78] sm:$0xff] }
  0x2e   : > { %1005 = vmatpush.bf16.msrb.mxu0 %v2095_v43  ;;  %956 = vmatmul.bf16.vlgmr.msra.gmra.mxu1 %v2830_v50  ;;  %v2126_v23 = vld [vmem:[%s3547_s1 + $0x2b0] sm:$0xf]  ;;  %v2457_v24 = vld [vmem:[%s3547_s1 + $0x2b4] sm:$0xf0]  ;;  %v302_v26 = vld [vmem:[%s2805_s16 + $0x80] sm:$0xff]  ;;  %v2063_v29 = vor.u32 %v2441_v21, %v2062_v20  ;;  %v2916_v33 = vpack.c.bf16 %v307_v19, %v300_v17 }
  0x2f   : > { %1024 = vmatpush.bf16.msrb.mxu1 %v2159_v49  ;;  %975 = vmatmul.bf16.vlgmr.msra.gmra.mxu2 %v2832_v51  ;;  %v308_v25 = vld [vmem:[%s2805_s16 + $0xb0] sm:$0xff]  ;;  %v309_v27 = vld [vmem:[%s2805_s16 + $0xb8] sm:$0xff]  ;;  %v303_v30 = vld [vmem:[%s2805_s16 + $0x88] sm:$0xff]  ;;  %v2127_v34 = vor.u32 %v2457_v24, %v2126_v23 }
  0x30   : > { %994 = vmatmul.bf16.vlgmr.msra.gmra.mxu3 %v2839_v55  ;;  %1050 = vmatpush.bf16.msrb.mxu2 %v2167_v12  ;;  %v310_v31 = vld [vmem:[%s2805_s16 + $0xc0] sm:$0xff]  ;;  %v2376_v32 = vld [vmem:[%s3547_s1 + $0x34] sm:$0xf]  ;;  %v1808_v35 = vld [vmem:[%s3547_s1 + $0x38] sm:$0xf0]  ;;  %v2927_v38 = vpack.c.bf16 %v308_v25, %v301_v22  ;;  %v2929_v39 = vpack.c.bf16 %v309_v27, %v302_v26 }
  0x31   : > { %1062 = vmatpush.bf16.msrb.mxu3 %v1843_v56  ;;  %v2054_v36 = vld [vmem:[%s3547_s1 + $0x220] sm:$0xf]  ;;  %v2439_v37 = vld [vmem:[%s3547_s1 + $0x224] sm:$0xf0]  ;;  %v2937_v42 = vpack.c.bf16 %v310_v31, %v303_v30  ;;  %v2432_v43 = vld [vmem:[%s3547_s1 + $0x1f4] sm:$0xf]  ;;  %v1811_v46 = vor.u32 %v2376_v32, %v1808_v35 }
  0x32   : > { %1006 = vmatpush.bf16.msrb.mxu0 %v2087_v57  ;;  %v2118_v40 = vld [vmem:[%s3547_s1 + $0x2a0] sm:$0xf]  ;;  %v2455_v41 = vld [vmem:[%s3547_s1 + $0x2a4] sm:$0xf0]  ;;  %v2032_v44 = vld [vmem:[%s3547_s1 + $0x1f8] sm:$0xf0]  ;;  %v2055_v47 = vor.u32 %v2439_v37, %v2054_v36 }
  0x33   : > { %1025 = vmatpush.bf16.msrb.mxu1 %v2151_v59  ;;  %v2374_v48 = vld [vmem:[%s3547_s1 + $0x24] sm:$0xf]  ;;  %v1800_v49 = vld [vmem:[%s3547_s1 + $0x28] sm:$0xf0]  ;;  %v2035_v52 = vor.u32 %v2432_v43, %v2032_v44  ;;  %v2119_v53 = vor.u32 %v2455_v41, %v2118_v40  ;;  %v2046_v54 = vld [vmem:[%s3547_s1 + $0x210] sm:$0xf] }
  0x34   : > { %v2437_v56 = vld [vmem:[%s3547_s1 + $0x214] sm:$0xf0]  ;;  %v2430_v57 = vld [vmem:[%s3547_s1 + $0x1e4] sm:$0xf]  ;;  %v2110_v58 = vld [vmem:[%s3547_s1 + $0x290] sm:$0xf]  ;;  %v1803_v63 = vor.u32 %v2374_v48, %v1800_v49 }
  0x35   : > { %1063 = vmatpush.bf16.msrb.mxu3 %v1835_v1  ;;  %v2453_v59 = vld [vmem:[%s3547_s1 + $0x294] sm:$0xf0]  ;;  %v2024_v60 = vld [vmem:[%s3547_s1 + $0x1e8] sm:$0xf0]  ;;  %v2372_v61 = vld [vmem:[%s3547_s1 + $0x14] sm:$0xf]  ;;  %1119 = vmatpush.bf16.msra.mxu2 %v2035_v52  ;;  %v2047_v0 = vor.u32 %v2437_v56, %v2046_v54 }
  0x36   : > { %1007 = vmatpush.bf16.msrb.mxu0 %v2079_v2  ;;  %v2027_v62 = vor.u32 %v2430_v57, %v2024_v60  ;;  %v1792_v1 = vld [vmem:[%s3547_s1 + $0x18] sm:$0xf0]  ;;  %v2428_v2 = vld [vmem:[%s3547_s1 + $0x1d4] sm:$0xf]  ;;  %v2111_v4 = vor.u32 %v2453_v59, %v2110_v58  ;;  %v2435_v6 = vld [vmem:[%s3547_s1 + $0x204] sm:$0xf0] }
  0x37   : > { %1026 = vmatpush.bf16.msrb.mxu1 %v2143_v5  ;;  %v2016_v3 = vld [vmem:[%s3547_s1 + $0x1d8] sm:$0xf0]  ;;  %v2038_v5 = vld [vmem:[%s3547_s1 + $0x200] sm:$0xf]  ;;  %v2451_v8 = vld [vmem:[%s3547_s1 + $0x284] sm:$0xf0] }
  0x38   : > { %v2102_v7 = vld [vmem:[%s3547_s1 + $0x280] sm:$0xf]  ;;  %v2400_v9 = vld [vmem:[%s3547_s1 + $0xf4] sm:$0xf]  ;;  %v1904_v10 = vld [vmem:[%s3547_s1 + $0xf8] sm:$0xf0]  ;;  %v2039_v15 = vor.u32 %v2435_v6, %v2038_v5 }
  0x39   : > { %1064 = vmatpush.bf16.msrb.mxu3 %v1827_v13  ;;  %v2416_v11 = vld [vmem:[%s3547_s1 + $0x174] sm:$0xf]  ;;  %v1968_v12 = vld [vmem:[%s3547_s1 + $0x178] sm:$0xf0]  ;;  %1120 = vmatpush.bf16.msra.mxu2 %v2027_v62  ;;  %v2019_v13 = vor.u32 %v2428_v2, %v2016_v3  ;;  %v2370_v16 = vld [vmem:[%s3547_s1 + $0x4] sm:$0xf]  ;;  %v2103_v19 = vor.u32 %v2451_v8, %v2102_v7  ;;  %v1907_v23 = vor.u32 %v2400_v9, %v1904_v10 }
  0x3a   : > { %1008 = vmatpush.bf16.msrb.mxu0 %v2071_v14  ;;  %v1795_v14 = vor.u32 %v2372_v61, %v1792_v1  ;;  %v2426_v17 = vld [vmem:[%s3547_s1 + $0x1c4] sm:$0xf]  ;;  %v1784_v20 = vld [vmem:[%s3547_s1 + $0x8] sm:$0xf0]  ;;  %v297_v22 = vld [vmem:[%s2805_s16 + $0x58] sm:$0xff]  ;;  %v1971_v25 = vor.u32 %v2416_v11, %v1968_v12 }
  0x3b   : > { %1027 = vmatpush.bf16.msrb.mxu1 %v2135_v18  ;;  %v2008_v18 = vld [vmem:[%s3547_s1 + $0x1c8] sm:$0xf0]  ;;  %v290_v21 = vld [vmem:[%s2805_s16 + $0x20] sm:$0xff]  ;;  %v2448_v26 = vld [vmem:[%s3547_s1 + $0x274] sm:$0xf]  ;;  %v1787_v32 = vor.u32 %v2370_v16, %v1784_v20 }
  0x3c   : > { %v291_v24 = vld [vmem:[%s2805_s16 + $0x28] sm:$0xff]  ;;  %v2096_v27 = vld [vmem:[%s3547_s1 + $0x278] sm:$0xf0]  ;;  %v2011_v31 = vor.u32 %v2426_v17, %v2008_v18  ;;  %v2414_v36 = vld [vmem:[%s3547_s1 + $0x164] sm:$0xf]  ;;  %v3042_v37 = vpack.c.bf16 %v297_v22, %v290_v21 }
  0x3d   : > { %1065 = vmatpush.bf16.msrb.mxu3 %v1819_v28  ;;  %942 = vmatmul.bf16.gmra.mxu0 %v2916_v33  ;;  %v298_v28 = vld [vmem:[%s2805_s16 + $0x60] sm:$0xff]  ;;  %v299_v30 = vld [vmem:[%s2805_s16 + $0x68] sm:$0xff]  ;;  %v2099_v40 = vor.u32 %v2448_v26, %v2096_v27  ;;  %v2424_v43 = vld [vmem:[%s3547_s1 + $0x1b4] sm:$0xf] }
  0x3e   : > { %1009 = vmatpush.bf16.msrb.mxu0 %v2063_v29  ;;  %961 = vmatmul.bf16.gmra.mxu1 %v2927_v38  ;;  %v292_v29 = vld [vmem:[%s2805_s16 + $0x30] sm:$0xff]  ;;  %v1896_v35 = vld [vmem:[%s3547_s1 + $0xe8] sm:$0xf0]  ;;  %v2000_v44 = vld [vmem:[%s3547_s1 + $0x1b8] sm:$0xf0] }
  0x3f   : > { %1028 = vmatpush.bf16.msrb.mxu1 %v2127_v34  ;;  %980 = vmatmul.bf16.gmra.mxu2 %v2929_v39  ;;  %v2398_v34 = vld [vmem:[%s3547_s1 + $0xe4] sm:$0xf]  ;;  %v1960_v41 = vld [vmem:[%s3547_s1 + $0x168] sm:$0xf0]  ;;  %v2396_v54 = vld [vmem:[%s3547_s1 + $0xd4] sm:$0xf]  ;;  %v2003_v58 = vor.u32 %v2424_v43, %v2000_v44 }
  0x40   : > { %999 = vmatmul.bf16.gmra.mxu3 %v2937_v42  ;;  %1121 = vmatpush.bf16.msra.mxu2 %v2019_v13  ;;  %v2446_v48 = vld [vmem:[%s3547_s1 + $0x264] sm:$0xf]  ;;  %v2088_v49 = vld [vmem:[%s3547_s1 + $0x268] sm:$0xf0]  ;;  %v1899_v52 = vor.u32 %v2398_v34, %v1896_v35  ;;  %v1888_v56 = vld [vmem:[%s3547_s1 + $0xd8] sm:$0xf0] }
  0x41   : > { %1066 = vmatpush.bf16.msrb.mxu3 %v1811_v46  ;;  %v3053_v46 = vpack.c.bf16 %v298_v28, %v291_v24  ;;  %v2412_v57 = vld [vmem:[%s3547_s1 + $0x154] sm:$0xf]  ;;  %v2091_v59 = vor.u32 %v2446_v48, %v2088_v49  ;;  %v1952_v60 = vld [vmem:[%s3547_s1 + $0x158] sm:$0xf0]  ;;  %v2422_v61 = vld [vmem:[%s3547_s1 + $0x1a4] sm:$0xf]  ;;  %v1891_v1 = vor.u32 %v2396_v54, %v1888_v56 }
  0x42   : > { %1010 = vmatpush.bf16.msrb.mxu0 %v2055_v47  ;;  %v3055_v47 = vpack.c.bf16 %v299_v30, %v292_v29  ;;  %v1992_v62 = vld [vmem:[%s3547_s1 + $0x1a8] sm:$0xf0]  ;;  %v1955_v2 = vor.u32 %v2412_v57, %v1952_v60  ;;  %v2394_v3 = vld [vmem:[%s3547_s1 + $0xc4] sm:$0xf]  ;;  %v2420_v8 = vld [vmem:[%s3547_s1 + $0x194] sm:$0xf] }
  0x43   : > { %1029 = vmatpush.bf16.msrb.mxu1 %v2119_v53  ;;  %v1963_v53 = vor.u32 %v2414_v36, %v1960_v41  ;;  %v2410_v5 = vld [vmem:[%s3547_s1 + $0x144] sm:$0xf]  ;;  %v1944_v7 = vld [vmem:[%s3547_s1 + $0x148] sm:$0xf0]  ;;  %v1984_v9 = vld [vmem:[%s3547_s1 + $0x198] sm:$0xf0] }
  0x44   : > { %1122 = vmatpush.bf16.msra.mxu2 %v2011_v31  ;;  %v2442_v10 = vld [vmem:[%s3547_s1 + $0x244] sm:$0xf]  ;;  %v2072_v11 = vld [vmem:[%s3547_s1 + $0x248] sm:$0xf0]  ;;  %v2392_v13 = vld [vmem:[%s3547_s1 + $0xb4] sm:$0xf] }
  0x45   : > { %1067 = vmatpush.bf16.msrb.mxu3 %v1803_v63  ;;  %v2444_v63 = vld [vmem:[%s3547_s1 + $0x254] sm:$0xf]  ;;  %v311_v16 = vld [vmem:[%s2805_s16 + $0xc8] sm:$0xff]  ;;  %v1872_v17 = vld [vmem:[%s3547_s1 + $0xb8] sm:$0xf0]  ;;  %v2075_v20 = vor.u32 %v2442_v10, %v2072_v11 }
  0x46   : > { %1011 = vmatpush.bf16.msrb.mxu0 %v2047_v0  ;;  %v2080_v0 = vld [vmem:[%s3547_s1 + $0x258] sm:$0xf0]  ;;  %v2408_v18 = vld [vmem:[%s3547_s1 + $0x134] sm:$0xf]  ;;  %v2418_v22 = vld [vmem:[%s3547_s1 + $0x184] sm:$0xf]  ;;  %v1875_v30 = vor.u32 %v2392_v13, %v1872_v17 }
  0x47   : > { %1030 = vmatpush.bf16.msrb.mxu1 %v2111_v4  ;;  %v1880_v4 = vld [vmem:[%s3547_s1 + $0xc8] sm:$0xf0]  ;;  %v2083_v6 = vor.u32 %v2444_v63, %v2080_v0  ;;  %v1936_v21 = vld [vmem:[%s3547_s1 + $0x138] sm:$0xf0]  ;;  %v312_v27 = vld [vmem:[%s2805_s16 + $0xd0] sm:$0xff] }
  0x48   : > { %1123 = vmatpush.bf16.msra.mxu2 %v2003_v58  ;;  %v1883_v12 = vor.u32 %v2394_v3, %v1880_v4  ;;  %v305_v24 = vld [vmem:[%s2805_s16 + $0x98] sm:$0xff]  ;;  %v306_v28 = vld [vmem:[%s2805_s16 + $0xa0] sm:$0xff]  ;;  %v1939_v31 = vor.u32 %v2408_v18, %v1936_v21  ;;  %v1864_v34 = vld [vmem:[%s3547_s1 + $0xa8] sm:$0xf0] }
  0x49   : > { %1068 = vmatpush.bf16.msrb.mxu3 %v1795_v14  ;;  %v1947_v14 = vor.u32 %v2410_v5, %v1944_v7  ;;  %v2064_v26 = vld [vmem:[%s3547_s1 + $0x238] sm:$0xf0]  ;;  %v2406_v41 = vld [vmem:[%s3547_s1 + $0x124] sm:$0xf]  ;;  %v1928_v43 = vld [vmem:[%s3547_s1 + $0x128] sm:$0xf0]  ;;  %v3160_v44 = vpack.c.bf16 %v312_v27, %v305_v24 }
  0x4a   : > { %1012 = vmatpush.bf16.msrb.mxu0 %v2039_v15  ;;  %v304_v15 = vld [vmem:[%s2805_s16 + $0x90] sm:$0xff]  ;;  %v313_v29 = vld [vmem:[%s2805_s16 + $0xd8] sm:$0xff]  ;;  %v2438_v49 = vld [vmem:[%s3547_s1 + $0x224] sm:$0xf]  ;;  %v1931_v54 = vor.u32 %v2406_v41, %v1928_v43 }
  0x4b   : > { %1031 = vmatpush.bf16.msrb.mxu1 %v2103_v19  ;;  %v1987_v19 = vor.u32 %v2420_v8, %v1984_v9  ;;  %v3152_v36 = vpack.c.bf16 %v311_v16, %v304_v15  ;;  %v3162_v48 = vpack.c.bf16 %v313_v29, %v306_v28  ;;  %v2388_v56 = vld [vmem:[%s3547_s1 + $0x94] sm:$0xf]  ;;  %v1856_v57 = vld [vmem:[%s3547_s1 + $0x98] sm:$0xf0]  ;;  %v2386_v0 = vld [vmem:[%s3547_s1 + $0x84] sm:$0xf] }
  0x4c   : > { %v1920_v60 = vld [vmem:[%s3547_s1 + $0x118] sm:$0xf0]  ;;  %v1859_v63 = vor.u32 %v2388_v56, %v1856_v57  ;;  %v2402_v3 = vld [vmem:[%s3547_s1 + $0x104] sm:$0xf]  ;;  %v2040_v7 = vld [vmem:[%s3547_s1 + $0x208] sm:$0xf0] }
  0x4d   : > { %1069 = vmatpush.bf16.msrb.mxu3 %v1787_v32  ;;  %1013 = vmatmul.bf16.vlgmr.msrb.gmra.mxu0 %v3042_v37  ;;  %v2390_v32 = vld [vmem:[%s3547_s1 + $0xa4] sm:$0xf]  ;;  %v2168_v9 = vld [vmem:[%s3547_s1 + $0x308] sm:$0xf0]  ;;  %v2460_v18 = vld [vmem:[%s3547_s1 + $0x2d4] sm:$0xf] }
  0x4e   : > { %1081 = vmatpush.bf16.msra.mxu0 %v1907_v23  ;;  %1032 = vmatmul.bf16.vlgmr.msrb.gmra.mxu1 %v3053_v46  ;;  %v1976_v23 = vld [vmem:[%s3547_s1 + $0x188] sm:$0xf0]  ;;  %v2434_v5 = vld [vmem:[%s3547_s1 + $0x204] sm:$0xf]  ;;  %v2128_v24 = vld [vmem:[%s3547_s1 + $0x2b8] sm:$0xf0] }
  0x4f   : > { %1100 = vmatpush.bf16.msra.mxu1 %v1971_v25  ;;  %2172 = vmatmul.msk.bf16.vlgmr.msrb.gmra.mxu2 %vm922_vm0, %v3055_v47  ;;  %v2440_v25 = vld [vmem:[%s3547_s1 + $0x234] sm:$0xf]  ;;  %v1979_v35 = vor.u32 %v2418_v22, %v1976_v23  ;;  %v2466_v8 = vld [vmem:[%s3547_s1 + $0x304] sm:$0xf]  ;;  %v2043_v13 = vor.u32 %v2434_v5, %v2040_v7  ;;  %v2152_v16 = vld [vmem:[%s3547_s1 + $0x2e8] sm:$0xf0] }
  0x50   : > { %1070 = vmatmul.bf16.vlgmr.msrb.gmra.mxu3 %v2825_v45  ;;  %v1995_v45 = vor.u32 %v2422_v61, %v1992_v62  ;;  %v2436_v61 = vld [vmem:[%s3547_s1 + $0x214] sm:$0xf]  ;;  %v2048_v62 = vld [vmem:[%s3547_s1 + $0x218] sm:$0xf0]  ;;  %v2462_v15 = vld [vmem:[%s3547_s1 + $0x2e4] sm:$0xf] }
  0x51   : > { %1138 = vmatpush.bf16.msra.mxu3 %v2099_v40  ;;  %v2067_v40 = vor.u32 %v2440_v25, %v2064_v26  ;;  %v2051_v4 = vor.u32 %v2436_v61, %v2048_v62  ;;  %v2155_v17 = vor.u32 %v2462_v15, %v2152_v16  ;;  %v2458_v21 = vld [vmem:[%s3547_s1 + $0x2c4] sm:$0xf]  ;;  %v2136_v22 = vld [vmem:[%s3547_s1 + $0x2c8] sm:$0xf0]  ;;  %v2452_v26 = vld [vmem:[%s3547_s1 + $0x294] sm:$0xf] }
  0x52   : > { %1082 = vmatpush.bf16.msra.mxu0 %v1899_v52  ;;  %1124 = vmatpush.bf16.msra.mxu2 %v1995_v45  ;;  %v2056_v52 = vld [vmem:[%s3547_s1 + $0x228] sm:$0xf0]  ;;  %v2464_v45 = vld [vmem:[%s3547_s1 + $0x2f4] sm:$0xf]  ;;  %v2139_v23 = vor.u32 %v2458_v21, %v2136_v22  ;;  %v2112_v27 = vld [vmem:[%s3547_s1 + $0x298] sm:$0xf0] }
  0x53   : > { %1101 = vmatpush.bf16.msra.mxu1 %v1963_v53  ;;  %v1867_v53 = vor.u32 %v2390_v32, %v1864_v34  ;;  %v2059_v58 = vor.u32 %v2438_v49, %v2056_v52  ;;  %v2115_v28 = vor.u32 %v2452_v26, %v2112_v27  ;;  %v2450_v29 = vld [vmem:[%s3547_s1 + $0x284] sm:$0xf]  ;;  %v2226_v34 = vld [vmem:[%s3549_s3 + $0x60] sm:$0xf]  ;;  %v2228_v41 = vld [vmem:[%s3549_s3 + $0x68] sm:$0xf0] }
  0x54   : > { %v2478_v49 = vld [vmem:[%s3549_s3 + $0x54] sm:$0xf]  ;;  %v2212_v62 = vld [vmem:[%s3549_s3 + $0x48] sm:$0xf0]  ;;  %v2471_v15 = vld [vmem:[%s3549_s3 + $0x14] sm:$0xf0] }
  0x55   : > { %1139 = vmatpush.bf16.msra.mxu3 %v2091_v59  ;;  %v2404_v59 = vld [vmem:[%s3547_s1 + $0x114] sm:$0xf] }
  0x56   : > { %1083 = vmatpush.bf16.msra.mxu0 %v1891_v1  ;;  %1125 = vmatpush.bf16.msra.mxu2 %v1987_v19  ;;  %v1923_v1 = vor.u32 %v2404_v59, %v1920_v60  ;;  %v2144_v19 = vld [vmem:[%s3547_s1 + $0x2d8] sm:$0xf0]  ;;  %v2477_v59 = vld [vmem:[%s3549_s3 + $0x44] sm:$0xf0]  ;;  %v2476_v60 = vld [vmem:[%s3549_s3 + $0x44] sm:$0xf] }
  0x57   : > { %1102 = vmatpush.bf16.msra.mxu1 %v1955_v2  ;;  %v1848_v2 = vld [vmem:[%s3547_s1 + $0x88] sm:$0xf0]  ;;  %v2470_v16 = vld [vmem:[%s3549_s3 + $0x14] sm:$0xf] }
  0x58   : > { %v1851_v10 = vor.u32 %v2386_v0, %v1848_v2  ;;  %v2202_v0 = vld [vmem:[%s3549_s3 + $0x30] sm:$0xf]  ;;  %v2474_v2 = vld [vmem:[%s3549_s3 + $0x34] sm:$0xf] }
  0x59   : > { %1140 = vmatpush.bf16.msra.mxu3 %v2083_v6  ;;  %v2160_v6 = vld [vmem:[%s3547_s1 + $0x2f8] sm:$0xf0] }
  0x5a   : > { %1084 = vmatpush.bf16.msra.mxu0 %v1883_v12  ;;  %1126 = vmatpush.bf16.msra.mxu2 %v1979_v35  ;;  %v2163_v12 = vor.u32 %v2464_v45, %v2160_v6  ;;  %v2481_v35 = vld [vmem:[%s3549_s3 + $0x64] sm:$0xf0] }
  0x5b   : > { %1103 = vmatpush.bf16.msra.mxu1 %v1947_v14  ;;  %v2171_v14 = vor.u32 %v2466_v8, %v2168_v9  ;;  %v2194_v8 = vld [vmem:[%s3549_s3 + $0x20] sm:$0xf]  ;;  %v2473_v9 = vld [vmem:[%s3549_s3 + $0x24] sm:$0xf0] }
  0x5d   : > { %1141 = vmatpush.bf16.msra.mxu3 %v2075_v20  ;;  %1018 = vmatmul.bf16.gmra.mxu0 %v3152_v36  ;;  %v2147_v20 = vor.u32 %v2460_v18, %v2144_v19  ;;  %v2188_v18 = vld [vmem:[%s3549_s3 + $0x18] sm:$0xf0] }
  0x5e   : > { %1085 = vmatpush.bf16.msra.mxu0 %v1875_v30  ;;  %1037 = vmatmul.bf16.gmra.mxu1 %v3160_v44  ;;  %v2104_v30 = vld [vmem:[%s3547_s1 + $0x288] sm:$0xf0] }
  0x5f   : > { %1104 = vmatpush.bf16.msra.mxu1 %v1939_v31  ;;  %2173 = vmatmul.msk.bf16.gmra.mxu2 %vm922_vm0, %v3162_v48  ;;  %v2107_v31 = vor.u32 %v2450_v29, %v2104_v30 }
  0x60   : > { %1075 = vmatmul.bf16.gmra.mxu3 %v2916_v33  ;;  %v1912_v33 = vld [vmem:[%s3547_s1 + $0x108] sm:$0xf0] }
  0x61   : > { %1142 = vmatpush.bf16.msra.mxu3 %v2067_v40  ;;  %v1915_v11 = vor.u32 %v2402_v3, %v1912_v33  ;;  %v2227_v40 = vor.u32 %v2481_v35, %v2226_v34  ;;  %v2204_v33 = vld [vmem:[%s3549_s3 + $0x38] sm:$0xf0] }
  0x62   : > { %1086 = vmatpush.bf16.msra.mxu0 %v1867_v53  ;;  %v2220_v53 = vld [vmem:[%s3549_s3 + $0x58] sm:$0xf0]  ;;  %v2207_v5 = vor.u32 %v2474_v2, %v2204_v33  ;;  %v2298_v33 = vld [vmem:[%s3549_s3 + $0xf0] sm:$0xf] }
  0x63   : > { %1105 = vmatpush.bf16.msra.mxu1 %v1931_v54  ;;  %v2223_v54 = vor.u32 %v2478_v49, %v2220_v53 }
  0x65   : > { %1143 = vmatpush.bf16.msra.mxu3 %v2059_v58  ;;  %v2210_v58 = vld [vmem:[%s3549_s3 + $0x40] sm:$0xf] }
  0x66   : > { %1087 = vmatpush.bf16.msra.mxu0 %v1859_v63  ;;  %v2211_v61 = vor.u32 %v2477_v59, %v2210_v58  ;;  %v2215_v63 = vor.u32 %v2476_v60, %v2212_v62 }
  0x67   : > { %1106 = vmatpush.bf16.msra.mxu1 %v1923_v1  ;;  %v2475_v1 = vld [vmem:[%s3549_s3 + $0x34] sm:$0xf0] }
  0x68   : > { %v2203_v3 = vor.u32 %v2475_v1, %v2202_v0 }
  0x69   : > { %1144 = vmatpush.bf16.msra.mxu3 %v2051_v4 }
  0x6a   : > { %1088 = vmatpush.bf16.msra.mxu0 %v1851_v10  ;;  %v2472_v10 = vld [vmem:[%s3549_s3 + $0x24] sm:$0xf] }
  0x6b   : > { %1107 = vmatpush.bf16.msra.mxu1 %v1915_v11  ;;  %v2195_v11 = vor.u32 %v2473_v9, %v2194_v8  ;;  %v2300_v8 = vld [vmem:[%s3549_s3 + $0xf8] sm:$0xf0] }
  0x6d   : > { %1145 = vmatpush.bf16.msra.mxu3 %v2043_v13  ;;  %1089 = vmatmul.bf16.vlgmr.msra.gmra.mxu0 %v2830_v50  ;;  %v2456_v50 = vld [vmem:[%s3547_s1 + $0x2b4] sm:$0xf] }
  0x6e   : > { %1157 = vmatpush.bf16.msrb.mxu0 %v2163_v12  ;;  %1108 = vmatmul.bf16.vlgmr.msra.gmra.mxu1 %v2832_v51  ;;  %v2131_v25 = vor.u32 %v2456_v50, %v2128_v24  ;;  %v2454_v51 = vld [vmem:[%s3547_s1 + $0x2a4] sm:$0xf]  ;;  %v2196_v12 = vld [vmem:[%s3549_s3 + $0x28] sm:$0xf0]  ;;  %v2178_v50 = vld [vmem:[%s3549_s3] sm:$0xf] }
  0x6f   : > { %1183 = vmatpush.bf16.msrb.mxu1 %v2171_v14  ;;  %1127 = vmatmul.bf16.vlgmr.msra.gmra.mxu2 %v2839_v55  ;;  %v2120_v55 = vld [vmem:[%s3547_s1 + $0x2a8] sm:$0xf0]  ;;  %v2199_v13 = vor.u32 %v2472_v10, %v2196_v12  ;;  %v2186_v14 = vld [vmem:[%s3549_s3 + $0x10] sm:$0xf]  ;;  %v2469_v24 = vld [vmem:[%s3549_s3 + $0x4] sm:$0xf0] }
  0x70   : > { %1146 = vmatmul.bf16.vlgmr.msra.gmra.mxu3 %v3042_v37  ;;  %v2123_v37 = vor.u32 %v2454_v51, %v2120_v55  ;;  %v2179_v51 = vor.u32 %v2469_v24, %v2178_v50  ;;  %v2180_v55 = vld [vmem:[%s3549_s3 + $0x8] sm:$0xf0] }
  0x72   : > { %1158 = vmatpush.bf16.msrb.mxu0 %v2155_v17  ;;  %v2187_v17 = vor.u32 %v2471_v15, %v2186_v14  ;;  %v2290_v15 = vld [vmem:[%s3549_s3 + $0xe0] sm:$0xf] }
  0x76   : > { %1159 = vmatpush.bf16.msrb.mxu0 %v2147_v20  ;;  %v2191_v20 = vor.u32 %v2470_v16, %v2188_v18  ;;  %v2497_v16 = vld [vmem:[%s3549_s3 + $0xe4] sm:$0xf0] }
  0x7a   : > { %1160 = vmatpush.bf16.msrb.mxu0 %v2139_v23 }
  0x7d   : > { %1094 = vmatmul.bf16.gmra.mxu0 %v2927_v38  ;;  %v2234_v38 = vld [vmem:[%s3549_s3 + $0x70] sm:$0xf] }
  0x7e   : > { %1161 = vmatpush.bf16.msrb.mxu0 %v2131_v25  ;;  %1113 = vmatmul.bf16.gmra.mxu1 %v2929_v39  ;;  %v2483_v39 = vld [vmem:[%s3549_s3 + $0x74] sm:$0xf0]  ;;  %v2468_v25 = vld [vmem:[%s3549_s3 + $0x4] sm:$0xf] }
  0x7f   : > { %1132 = vmatmul.bf16.gmra.mxu2 %v2937_v42  ;;  %v2482_v42 = vld [vmem:[%s3549_s3 + $0x74] sm:$0xf]  ;;  %v2183_v26 = vor.u32 %v2468_v25, %v2180_v55  ;;  %v2495_v55 = vld [vmem:[%s3549_s3 + $0xd4] sm:$0xf0] }
  0x80   : > { %1151 = vmatmul.bf16.gmra.mxu3 %v3152_v36  ;;  %v2480_v36 = vld [vmem:[%s3549_s3 + $0x64] sm:$0xf] }
  0x81   : > { %v2231_v43 = vor.u32 %v2480_v36, %v2228_v41 }
  0x82   : > { %1162 = vmatpush.bf16.msrb.mxu0 %v2123_v37  ;;  %v3378_v37 = vld [vmem:[%s3548_s2] sm:$0x3] }
  0x83   : > { %v428_v27 = vperm.slane %v3378_v37, 0 }
  0x86   : > { %1163 = vmatpush.bf16.msrb.mxu0 %v2115_v28 }
  0x8a   : > { %1164 = vmatpush.bf16.msrb.mxu0 %v2107_v31 }
  0x8d   : > { %1165 = vmatmul.bf16.vlgmr.msrb.gmra.mxu0 %v3053_v46  ;;  %v2235_v46 = vor.u32 %v2483_v39, %v2234_v38 }
  0x8e   : > { %2174 = vmatmul.msk.bf16.vlgmr.msrb.gmra.mxu1 %vm922_vm0, %v3055_v47  ;;  %v2236_v47 = vld [vmem:[%s3549_s3 + $0x78] sm:$0xf0] }
  0x8f   : > { %v2239_v32 = vor.u32 %v2482_v42, %v2236_v47  ;;  %1421 = vmatpush.bf16.msrb.mxu2 %v2235_v46 }
  0x91   : > { %1459 = vmatpush.bf16.msra.mxu0 %v2239_v32 }
  0x93   : > { %1422 = vmatpush.bf16.msrb.mxu2 %v2227_v40 }
  0x95   : > { %1460 = vmatpush.bf16.msra.mxu0 %v2231_v43 }
  0x99   : > { %1461 = vmatpush.bf16.msra.mxu0 %v2223_v54 }
  0x9d   : > { %1170 = vmatmul.bf16.gmra.mxu0 %v3160_v44  ;;  %v2218_v44 = vld [vmem:[%s3549_s3 + $0x50] sm:$0xf] }
  0x9e   : > { %2175 = vmatmul.msk.bf16.gmra.mxu1 %vm922_vm0, %v3162_v48  ;;  %v2479_v48 = vld [vmem:[%s3549_s3 + $0x54] sm:$0xf0]  ;;  %1462 = vmatpush.bf16.msra.mxu0 %v2215_v63 }
  0x9f   : > { %v2219_v52 = vor.u32 %v2479_v48, %v2218_v44 }
  0xa1   : > { %1423 = vmatpush.bf16.msrb.mxu2 %v2219_v52 }
  0xa2   : > { %1463 = vmatpush.bf16.msra.mxu0 %v2207_v5  ;;  %v2498_v5 = vld [vmem:[%s3549_s3 + $0xf4] sm:$0xf] }
  0xa3   : > { %v2303_v9 = vor.u32 %v2498_v5, %v2300_v8 }
  0xa5   : > { %1424 = vmatpush.bf16.msrb.mxu2 %v2211_v61  ;;  %1478 = vmatpush.bf16.msra.mxu1 %v2303_v9  ;;  %v2252_v9 = vld [vmem:[%s3549_s3 + $0x98] sm:$0xf0] }
  0xa6   : > { %1464 = vmatpush.bf16.msra.mxu0 %v2199_v13 }
  0xa9   : > { %1425 = vmatpush.bf16.msrb.mxu2 %v2203_v3 }
  0xaa   : > { %v938_v56 = vpop.f32.mrf.mxu0  ;;  %1465 = vmatpush.bf16.msra.mxu0 %v2191_v20  ;;  %v2292_v20 = vld [vmem:[%s3549_s3 + $0xe8] sm:$0xf0] }
  0xab   : > { %v957_v57 = vpop.f32.mrf.mxu1  ;;  %v939_v31 = vadd.f32 %v938_v56, %v428_v27 }
  0xad   : > { %1426 = vmatpush.bf16.msrb.mxu2 %v2195_v11  ;;  %v958_v39 = vadd.f32 %v957_v57, %v939_v31 }
  0xae   : > { %1466 = vmatpush.bf16.msra.mxu0 %v2183_v26  ;;  %v2494_v26 = vld [vmem:[%s3549_s3 + $0xd4] sm:$0xf] }
  0xb1   : > { %1427 = vmatpush.bf16.msrb.mxu2 %v2187_v17  ;;  %v2496_v17 = vld [vmem:[%s3549_s3 + $0xe4] sm:$0xf] }
  0xb2   : > { %v976_v4 = vpop.f32.mrf.mxu2  ;;  %v940_v45 = vpop.f32.mrf.mxu0 }
  0xb3   : > { %v995_v6 = vpop.f32.mrf.mxu3  ;;  %v959_v7 = vpop.f32.mrf.mxu1  ;;  %v941_v42 = vadd.f32 %v940_v45, %v428_v27  ;;  %v977_v47 = vadd.f32 %v976_v4, %v958_v39  ;;  %v2499_v4 = vld [vmem:[%s3549_s3 + $0xf4] sm:$0xf0]  ;;  %v2274_v39 = vld [vmem:[%s3549_s3 + $0xc0] sm:$0xf] }
  0xb5   : > { %1428 = vmatpush.bf16.msrb.mxu2 %v2179_v51  ;;  %v960_v35 = vadd.f32 %v959_v7, %v941_v42  ;;  %v996_v36 = vadd.f32 %v995_v6, %v977_v47  ;;  %v2299_v7 = vor.u32 %v2499_v4, %v2298_v33  ;;  %v2282_v51 = vld [vmem:[%s3549_s3 + $0xd0] sm:$0xf]  ;;  %v2493_v42 = vld [vmem:[%s3549_s3 + $0xc4] sm:$0xf0] }
  0xb7   : > { %1440 = vmatpush.bf16.msrb.mxu3 %v2299_v7  ;;  %v2486_v7 = vld [vmem:[%s3549_s3 + $0x94] sm:$0xf] }
  0xba   : > { %v978_v19 = vpop.f32.mrf.mxu2  ;;  %v943_v21 = vpop.f32.mrf.mxu0 }
  0xbb   : > { %v997_v22 = vpop.f32.mrf.mxu3  ;;  %v962_v23 = vpop.f32.mrf.mxu1  ;;  %v979_v40 = vadd.f32 %v978_v19, %v960_v35  ;;  %v944_v53 = vadd.f32 %v943_v21, %v428_v27  ;;  %v2291_v19 = vor.u32 %v2497_v16, %v2290_v15  ;;  %v2244_v16 = vld [vmem:[%s3549_s3 + $0x88] sm:$0xf0] }
  0xbd   : > { %v998_v48 = vadd.f32 %v997_v22, %v979_v40  ;;  %v963_v59 = vadd.f32 %v962_v23, %v944_v53  ;;  %v2295_v22 = vor.u32 %v2496_v17, %v2292_v20  ;;  %1441 = vmatpush.bf16.msrb.mxu3 %v2291_v19  ;;  %v429_v17 = vperm.slane %v3378_v37, 1 }
  0xbf   : > { %1479 = vmatpush.bf16.msra.mxu1 %v2295_v22 }
  0xc2   : > { %v981_v28 = vpop.f32.mrf.mxu2  ;;  %v945_v29 = vpop.f32.mrf.mxu0 }
  0xc3   : > { %v964_v30 = vpop.f32.mrf.mxu1  ;;  %v1000_v38 = vpop.f32.mrf.mxu3  ;;  %v946_v57 = vadd.f32 %v945_v29, %v428_v27  ;;  %v982_v63 = vadd.f32 %v981_v28, %v963_v59  ;;  %v2283_v29 = vor.u32 %v2495_v55, %v2282_v51 }
  0xc5   : > { %v965_v45 = vadd.f32 %v964_v30, %v946_v57  ;;  %v1001_v10 = vadd.f32 %v1000_v38, %v982_v63  ;;  %v2284_v30 = vld [vmem:[%s3549_s3 + $0xd8] sm:$0xf0]  ;;  %1442 = vmatpush.bf16.msrb.mxu3 %v2283_v29  ;;  %v2258_v63 = vld [vmem:[%s3549_s3 + $0xa0] sm:$0xf] }
  0xc6   : > { %v2287_v31 = vor.u32 %v2494_v26, %v2284_v30 }
  0xc8   : > { %1480 = vmatpush.bf16.msra.mxu1 %v2287_v31 }
  0xca   : > { %v983_v46 = vpop.f32.mrf.mxu2  ;;  %v1014_v32 = vpop.f32.mrf.mxu0 }
  0xcb   : > { %v1033_v34 = vpop.f32.mrf.mxu1  ;;  %v1002_v41 = vpop.f32.mrf.mxu3  ;;  %v1015_v43 = vadd.f32 %v1014_v32, %v996_v36  ;;  %v984_v11 = vadd.f32 %v983_v46, %v965_v45  ;;  %v2492_v46 = vld [vmem:[%s3549_s3 + $0xc4] sm:$0xf]  ;;  %v2275_v32 = vor.u32 %v2493_v42, %v2274_v39  ;;  %v2250_v45 = vld [vmem:[%s3549_s3 + $0x90] sm:$0xf] }
  0xcd   : > { %v1034_v54 = vadd.f32 %v1033_v34, %v1015_v43  ;;  %v1003_v23 = vadd.f32 %v1002_v41, %v984_v11  ;;  %v2276_v34 = vld [vmem:[%s3549_s3 + $0xc8] sm:$0xf0]  ;;  %1443 = vmatpush.bf16.msrb.mxu3 %v2275_v32 }
  0xce   : > { %v2279_v36 = vor.u32 %v2492_v46, %v2276_v34 }
  0xd0   : > { %1481 = vmatpush.bf16.msra.mxu1 %v2279_v36 }
  0xd2   : > { %v1052_v44 = vpop.f32.mrf.mxu2  ;;  %v1016_v49 = vpop.f32.mrf.mxu0 }
  0xd3   : > { %v1035_v52 = vpop.f32.mrf.mxu1  ;;  %v1017_v58 = vadd.f32 %v1016_v49, %v998_v48  ;;  %v1053_v56 = vadd.f32 %v1052_v44, %v1034_v54  ;;  %v3381_v61 = vpop.f32.mrf.mxu3  ;;  %v2266_v48 = vld [vmem:[%s3549_s3 + $0xb0] sm:$0xf]  ;;  %v2491_v49 = vld [vmem:[%s3549_s3 + $0xb4] sm:$0xf0] }
  0xd4   : > { %v1072_v22 = vadd.f32 %v3381_v61, %v429_v17 }
  0xd5   : > { %v1036_v60 = vadd.f32 %v1035_v52, %v1017_v58  ;;  %vm1195_vm1 = vcmp.ge.f32.partialorder %v1053_v56, 0.0  ;;  %v1203_v0 = vmul.f32 0.01, %v1053_v56  ;;  %v2490_v52 = vld [vmem:[%s3549_s3 + $0xb4] sm:$0xf]  ;;  %v2267_v58 = vor.u32 %v2491_v49, %v2266_v48 }
  0xd7   : > { %v1211_v12 = vsel %vm1195_vm1, %v1053_v56, %v1203_v0  ;;  %v2268_v56 = vld [vmem:[%s3549_s3 + $0xb8] sm:$0xf0]  ;;  %1444 = vmatpush.bf16.msrb.mxu3 %v2267_v58  ;;  %v2489_v0 = vld [vmem:[%s3549_s3 + $0xa4] sm:$0xf0] }
  0xd8   : > { %v2271_v59 = vor.u32 %v2490_v52, %v2268_v56 }
  0xda   : > { %v1054_v62 = vpop.f32.mrf.mxu2  ;;  %v1019_v2 = vpop.f32.mrf.mxu0  ;;  %1482 = vmatpush.bf16.msra.mxu1 %v2271_v59 }
  0xdb   : > { %v1055_v1 = vadd.f32 %v1054_v62, %v1036_v60  ;;  %v1038_v3 = vpop.f32.mrf.mxu1  ;;  %v1020_v18 = vadd.f32 %v1019_v2, %v1001_v10  ;;  %v3408_v50 = vpop.f32.mrf.mxu3  ;;  %v2259_v2 = vor.u32 %v2489_v0, %v2258_v63  ;;  %v2255_v10 = vor.u32 %v2486_v7, %v2252_v9 }
  0xdc   : > { %v1074_v55 = vadd.f32 %v3408_v50, %v429_v17 }
  0xdd   : > { %vm1197_vm2 = vcmp.ge.f32.partialorder %v1055_v1, 0.0  ;;  %v1205_v6 = vmul.f32 0.01, %v1055_v1  ;;  %v1039_v27 = vadd.f32 %v1038_v3, %v1020_v18  ;;  %v2260_v3 = vld [vmem:[%s3549_s3 + $0xa8] sm:$0xf0]  ;;  %1445 = vmatpush.bf16.msrb.mxu3 %v2259_v2 }
  0xdf   : > { %v1213_v13 = vsel %vm1197_vm2, %v1055_v1, %v1205_v6  ;;  %v2488_v1 = vld [vmem:[%s3549_s3 + $0xa4] sm:$0xf]  ;;  %v2487_v6 = vld [vmem:[%s3549_s3 + $0x94] sm:$0xf0] }
  0xe0   : > { %v1219_v14 = vpack.c.bf16 %v1213_v13, %v1211_v12  ;;  %v2263_v33 = vor.u32 %v2488_v1, %v2260_v3  ;;  %v2251_v8 = vor.u32 %v2487_v6, %v2250_v45  ;;  %v2242_v12 = vld [vmem:[%s3549_s3 + $0x80] sm:$0xf]  ;;  %v2485_v13 = vld [vmem:[%s3549_s3 + $0x84] sm:$0xf0] }
  0xe1   : > { %v2243_v15 = vor.u32 %v2485_v13, %v2242_v12  ;;  %v2515_v13 = vld [vmem:[%s3551_s5 + $0x78] sm:$0xff] }
  0xe2   : > { %v1057_v21 = vpop.f32.mrf.mxu2  ;;  %1429 = vmatmul.bf16.vlgmr.msrb.gmra.mxu2 %v1219_v14  ;;  %1467 = vmatmul.bf16.vlgmr.msra.gmra.mxu0 %v1219_v14  ;;  %v1021_v24 = vpop.f32.mrf.mxu0  ;;  %v2484_v14 = vld [vmem:[%s3549_s3 + $0x84] sm:$0xf] }
  0xe3   : > { %v1040_v25 = vpop.f32.mrf.mxu1  ;;  %v1022_v28 = vadd.f32 %v1021_v24, %v1003_v23  ;;  %v1058_v38 = vadd.f32 %v1057_v21, %v1039_v27  ;;  %v1076_v53 = vpop.f32.mrf.mxu3  ;;  %1483 = vmatpush.bf16.msra.mxu1 %v2263_v33  ;;  %1446 = vmatpush.bf16.msrb.mxu3 %v2251_v8  ;;  %v2247_v18 = vor.u32 %v2484_v14, %v2244_v16  ;;  %v2507_v14 = vld [vmem:[%s3551_s5 + $0x38] sm:$0xff]  ;;  %v2506_v16 = vld [vmem:[%s3551_s5 + $0x30] sm:$0xff] }
  0xe4   : > { %v1077_v42 = vadd.f32 %v1076_v53, %v429_v17  ;;  %1657 = vmatpush.bf16.msra.mxu2 %v2507_v14 }
  0xe5   : > { %v1041_v47 = vadd.f32 %v1040_v25, %v1022_v28  ;;  %v1207_v40 = vmul.f32 0.01, %v1058_v38  ;;  %vm1199_vm3 = vcmp.ge.f32.partialorder %v1058_v38, 0.0 }
  0xe7   : > { %v1215_v57 = vsel %vm1199_vm3, %v1058_v38, %v1207_v40  ;;  %1484 = vmatpush.bf16.msra.mxu1 %v2255_v10  ;;  %1447 = vmatpush.bf16.msrb.mxu3 %v2243_v15  ;;  %v2514_v15 = vld [vmem:[%s3551_s5 + $0x70] sm:$0xff] }
  0xe8   : > { %1658 = vmatpush.bf16.msra.mxu2 %v2506_v16 }
  0xea   : > { %v1059_v35 = vpop.f32.mrf.mxu2  ;;  %v1090_v43 = vpop.f32.mrf.mxu0 }
  0xeb   : > { %v1060_v41 = vadd.f32 %v1059_v35, %v1041_v47  ;;  %v1109_v44 = vpop.f32.mrf.mxu1  ;;  %v1078_v11 = vpop.f32.mrf.mxu3  ;;  %1485 = vmatpush.bf16.msra.mxu1 %v2247_v18  ;;  %v1091_v24 = vadd.f32 %v1090_v43, %v1072_v22  ;;  %1676 = vmatpush.bf16.msra.mxu3 %v2515_v13  ;;  %v2505_v18 = vld [vmem:[%s3551_s5 + $0x28] sm:$0xff]  ;;  %v2510_v22 = vld [vmem:[%s3551_s5 + $0x50] sm:$0xff] }
  0xec   : > { %v1079_v43 = vadd.f32 %v1078_v11, %v429_v17  ;;  %v2513_v17 = vld [vmem:[%s3551_s5 + $0x68] sm:$0xff]  ;;  %1659 = vmatpush.bf16.msra.mxu2 %v2505_v18 }
  0xed   : > { %v1209_v54 = vmul.f32 0.01, %v1060_v41  ;;  %vm1201_vm4 = vcmp.ge.f32.partialorder %v1060_v41, 0.0  ;;  %v1110_v26 = vadd.f32 %v1109_v44, %v1091_v24  ;;  %v2509_v24 = vld [vmem:[%s3551_s5 + $0x48] sm:$0xff] }
  0xef   : > { %v1217_v60 = vsel %vm1201_vm4, %v1060_v41, %v1209_v54  ;;  %1677 = vmatpush.bf16.msra.mxu3 %v2514_v15 }
  0xf0   : > { %v1221_v62 = vpack.c.bf16 %v1217_v60, %v1215_v57 }
  0xf2   : > { %1434 = vmatmul.bf16.gmra.mxu2 %v1221_v62  ;;  %1472 = vmatmul.bf16.gmra.mxu0 %v1221_v62  ;;  %v1092_v4 = vpop.f32.mrf.mxu0  ;;  %v1128_v21 = vpop.f32.mrf.mxu2 }
  0xf3   : > { %v1111_v5 = vpop.f32.mrf.mxu1  ;;  %v1147_v23 = vpop.f32.mrf.mxu3  ;;  %v1129_v28 = vadd.f32 %v1128_v21, %v1110_v26  ;;  %v1093_v29 = vadd.f32 %v1092_v4, %v1074_v55  ;;  %1678 = vmatpush.bf16.msra.mxu3 %v2513_v17  ;;  %v2504_v21 = vld [vmem:[%s3551_s5 + $0x20] sm:$0xff]  ;;  %v2501_v55 = vld [vmem:[%s3551_s5 + $0x8] sm:$0xff] }
  0xf4   : > { %1660 = vmatpush.bf16.msra.mxu2 %v2504_v21  ;;  %v2500_v26 = vld [vmem:[%s3551_s5] sm:$0xff] }
  0xf5   : > { %v1112_v31 = vadd.f32 %v1111_v5, %v1093_v29  ;;  %v1148_v38 = vadd.f32 %v1147_v23, %v1129_v28  ;;  %v2503_v23 = vld [vmem:[%s3551_s5 + $0x18] sm:$0xff]  ;;  %v1255_v28 = vld [vmem:[%s3550_s4] sm:$0x3] }
  0xf6   : > { %v2536_v21 = vld [vmem:[%s3552_s6] ss:$0 sm:$0xff] }
  0xf8   : > { %1661 = vmatpush.bf16.msra.mxu2 %v2503_v23 }
  0xfa   : > { %v1095_v19 = vpop.f32.mrf.mxu0  ;;  %v1130_v27 = vpop.f32.mrf.mxu2 }
  0xfb   : > { %v1114_v20 = vpop.f32.mrf.mxu1  ;;  %v1149_v30 = vpop.f32.mrf.mxu3  ;;  %v1131_v46 = vadd.f32 %v1130_v27, %v1112_v31  ;;  %v1096_v61 = vadd.f32 %v1095_v19, %v1077_v42  ;;  %v2512_v19 = vld [vmem:[%s3551_s5 + $0x60] sm:$0xff] }
  0xfc   : > { %1679 = vmatpush.bf16.msra.mxu3 %v2512_v19 }
  0xfd   : > { %v1150_v34 = vadd.f32 %v1149_v30, %v1131_v46  ;;  %v1115_v44 = vadd.f32 %v1114_v20, %v1096_v61  ;;  %v2511_v20 = vld [vmem:[%s3551_s5 + $0x58] sm:$0xff]  ;;  %v1258_v30 = vperm.slane %v1255_v28, 1 }
 0x100   : > { %1680 = vmatpush.bf16.msra.mxu3 %v2511_v20 }
 0x102   : > { %v1097_v25 = vpop.f32.mrf.mxu0  ;;  %v1133_v32 = vpop.f32.mrf.mxu2 }
 0x103   : > { %v1116_v51 = vpop.f32.mrf.mxu1  ;;  %v1152_v50 = vpop.f32.mrf.mxu3  ;;  %v1134_v52 = vadd.f32 %v1133_v32, %v1115_v44  ;;  %v1098_v54 = vadd.f32 %v1097_v25, %v1079_v43  ;;  %v2502_v25 = vld [vmem:[%s3551_s5 + $0x10] sm:$0xff] }
 0x104   : > { %1681 = vmatpush.bf16.msra.mxu3 %v2510_v22  ;;  %1662 = vmatpush.bf16.msra.mxu2 %v2502_v25 }
 0x105   : > { %v1117_v62 = vadd.f32 %v1116_v51, %v1098_v54  ;;  %v1153_v63 = vadd.f32 %v1152_v50, %v1134_v52  ;;  %v2508_v51 = vld [vmem:[%s3551_s5 + $0x40] sm:$0xff] }
 0x108   : > { %1682 = vmatpush.bf16.msra.mxu3 %v2509_v24  ;;  %1663 = vmatpush.bf16.msra.mxu2 %v2501_v55 }
 0x10a   : > { %v1166_v37 = vpop.f32.mrf.mxu0  ;;  %v1135_v59 = vpop.f32.mrf.mxu2 }
 0x10b   : > { %v1185_v39 = vpop.f32.mrf.mxu1  ;;  %v1167_v47 = vadd.f32 %v1166_v37, %v1148_v38  ;;  %v1136_v1 = vadd.f32 %v1135_v59, %v1117_v62  ;;  %v1154_v3 = vpop.f32.mrf.mxu3 }
 0x10c   : > { %1683 = vmatpush.bf16.msra.mxu3 %v2508_v51  ;;  %1664 = vmatpush.bf16.msra.mxu2 %v2500_v26 }
 0x10d   : > { %v1186_v35 = vadd.f32 %v1185_v39, %v1167_v47  ;;  %v1155_v33 = vadd.f32 %v1154_v3, %v1136_v1  ;;  %v1257_v39 = vperm.slane %v1255_v28, 0 }
 0x10f   : > { %v1204_v48 = vmul.f32 0.01, %v1186_v35  ;;  %vm1196_vm5 = vcmp.ge.f32.partialorder %v1186_v35, 0.0 }
 0x111   : > { %v1212_v53 = vsel %vm1196_vm5, %v1186_v35, %v1204_v48 }
 0x112   : > { %v1168_v36 = vpop.f32.mrf.mxu0 }
 0x113   : > { %v1169_v40 = vadd.f32 %v1168_v36, %v1150_v34  ;;  %v1187_v41 = vpop.f32.mrf.mxu1 }
 0x115   : > { %v1188_v49 = vadd.f32 %v1187_v41, %v1169_v40 }
 0x117   : > { %vm1198_vm6 = vcmp.ge.f32.partialorder %v1188_v49, 0.0  ;;  %v1206_v58 = vmul.f32 0.01, %v1188_v49 }
 0x119   : > { %v1214_v56 = vsel %vm1198_vm6, %v1188_v49, %v1206_v58 }
 0x11a   : > { %v1220_v57 = vpack.c.bf16 %v1214_v56, %v1212_v53  ;;  %v1171_v60 = vpop.f32.mrf.mxu0 }
 0x11b   : > { %v1190_v0 = vpop.f32.mrf.mxu1  ;;  %v1172_v2 = vadd.f32 %v1171_v60, %v1153_v63 }
 0x11c   : > { %1448 = vmatmul.bf16.vlgmr.msrb.gmra.mxu3 %v1220_v57  ;;  %1486 = vmatmul.bf16.vlgmr.msra.gmra.mxu1 %v1220_v57 }
 0x11d   : > { %v1191_v4 = vadd.f32 %v1190_v0, %v1172_v2 }
 0x11f   : > { %v1208_v7 = vmul.f32 0.01, %v1191_v4  ;;  %vm1200_vm7 = vcmp.ge.f32.partialorder %v1191_v4, 0.0 }
 0x121   : > { %v1216_v10 = vsel %vm1200_vm7, %v1191_v4, %v1208_v7 }
 0x122   : > { %v1173_v5 = vpop.f32.mrf.mxu0 }
 0x123   : > { %v1174_v45 = vadd.f32 %v1173_v5, %v1155_v33  ;;  %v1192_v6 = vpop.f32.mrf.mxu1 }
 0x125   : > { %v1193_v8 = vadd.f32 %v1192_v6, %v1174_v45 }
 0x127   : > { %v1210_v9 = vmul.f32 0.01, %v1193_v8  ;;  %vm1202_vm8 = vcmp.ge.f32.partialorder %v1193_v8, 0.0 }
 0x129   : > { %v1218_v11 = vsel %vm1202_vm8, %v1193_v8, %v1210_v9 }
 0x12a   : > { %v1222_v12 = vpack.c.bf16 %v1218_v11, %v1216_v10 }
 0x12c   : > { %1453 = vmatmul.bf16.gmra.mxu3 %v1222_v12  ;;  %1491 = vmatmul.bf16.gmra.mxu1 %v1222_v12 }
 0x15f   : > { %v1468_v27 = vpop.f32.mrf.mxu0 }
 0x160   : > { %v1469_v38 = vadd.f32 %v1468_v27, %v1258_v30 }
 0x165   : > { %v1430_v29 = vpop.f32.mrf.mxu2 }
 0x166   : > { %v1431_v34 = vadd.f32 %v1430_v29, %v1257_v39 }
 0x167   : > { %v1470_v37 = vpop.f32.mrf.mxu0 }
 0x168   : > { %v1471_v32 = vadd.f32 %v1470_v37, %v1258_v30 }
 0x16d   : > { %v1432_v46 = vpop.f32.mrf.mxu2 }
 0x16e   : > { %v1433_v43 = vadd.f32 %v1432_v46, %v1257_v39 }
 0x16f   : > { %v1473_v40 = vpop.f32.mrf.mxu0 }
 0x170   : > { %v1474_v57 = vadd.f32 %v1473_v40, %v1258_v30 }
 0x175   : > { %v1435_v53 = vpop.f32.mrf.mxu2 }
 0x176   : > { %v1436_v4 = vadd.f32 %v1435_v53, %v1257_v39 }
 0x177   : > { %v1475_v63 = vpop.f32.mrf.mxu0 }
 0x178   : > { %v1476_v3 = vadd.f32 %v1475_v63, %v1258_v30 }
 0x17d   : > { %v1437_v6 = vpop.f32.mrf.mxu2 }
 0x17e   : > { %v1438_v9 = vadd.f32 %v1437_v6, %v1257_v39 }
 0x199   : > { %v1487_v31 = vpop.f32.mrf.mxu1 }
 0x19a   : > { %v1488_v42 = vadd.f32 %v1487_v31, %v1469_v38 }
 0x19c   : > { %v1506_v35 = vmul.f32 0.01, %v1488_v42  ;;  %vm1498_vm9 = vcmp.ge.f32.partialorder %v1488_v42, 0.0 }
 0x19e   : > { %v1514_v44 = vsel %vm1498_vm9, %v1488_v42, %v1506_v35 }
 0x19f   : > { %v1449_v47 = vpop.f32.mrf.mxu3 }
 0x1a0   : > { %v1450_v41 = vadd.f32 %v1449_v47, %v1431_v34 }
 0x1a1   : > { %v1489_v61 = vpop.f32.mrf.mxu1 }
 0x1a2   : > { %v1490_v36 = vadd.f32 %v1489_v61, %v1471_v32  ;;  %v1505_v54 = vmul.f32 0.01, %v1450_v41  ;;  %vm1497_vm11 = vcmp.ge.f32.partialorder %v1450_v41, 0.0 }
 0x1a4   : > { %vm1500_vm10 = vcmp.ge.f32.partialorder %v1490_v36, 0.0  ;;  %v1508_v50 = vmul.f32 0.01, %v1490_v36  ;;  %v1513_v60 = vsel %vm1497_vm11, %v1450_v41, %v1505_v54 }
 0x1a6   : > { %v1516_v48 = vsel %vm1500_vm10, %v1490_v36, %v1508_v50 }
 0x1a7   : > { %v1522_v49 = vpack.c.bf16 %v1516_v48, %v1514_v44  ;;  %v1451_v52 = vpop.f32.mrf.mxu3 }
 0x1a8   : > { %v1452_v58 = vadd.f32 %v1451_v52, %v1433_v43 }
 0x1a9   : > { %v1492_v56 = vpop.f32.mrf.mxu1  ;;  %1684 = vmatmul.bf16.vlgmr.msra.gmra.mxu3 %v1522_v49 }
 0x1aa   : > { %vm1499_vm12 = vcmp.ge.f32.partialorder %v1452_v58, 0.0  ;;  %v1507_v59 = vmul.f32 0.01, %v1452_v58  ;;  %v1493_v1 = vadd.f32 %v1492_v56, %v1474_v57 }
 0x1ac   : > { %v1515_v62 = vsel %vm1499_vm12, %v1452_v58, %v1507_v59  ;;  %v1510_v5 = vmul.f32 0.01, %v1493_v1  ;;  %vm1502_vm13 = vcmp.ge.f32.partialorder %v1493_v1, 0.0 }
 0x1ad   : > { %v1521_v0 = vpack.c.bf16 %v1515_v62, %v1513_v60 }
 0x1ae   : > { %v1518_v10 = vsel %vm1502_vm13, %v1493_v1, %v1510_v5 }
 0x1af   : > { %v1454_v2 = vpop.f32.mrf.mxu3  ;;  %1665 = vmatmul.bf16.vlgmr.msra.gmra.mxu2 %v1521_v0 }
 0x1b0   : > { %v1455_v7 = vadd.f32 %v1454_v2, %v1436_v4 }
 0x1b1   : > { %v1494_v33 = vpop.f32.mrf.mxu1 }
 0x1b2   : > { %v1495_v45 = vadd.f32 %v1494_v33, %v1476_v3  ;;  %v1509_v14 = vmul.f32 0.01, %v1455_v7  ;;  %vm1501_vm15 = vcmp.ge.f32.partialorder %v1455_v7, 0.0 }
 0x1b4   : > { %v1512_v8 = vmul.f32 0.01, %v1495_v45  ;;  %vm1504_vm14 = vcmp.ge.f32.partialorder %v1495_v45, 0.0  ;;  %v1517_v17 = vsel %vm1501_vm15, %v1455_v7, %v1509_v14 }
 0x1b6   : > { %v1520_v11 = vsel %vm1504_vm14, %v1495_v45, %v1512_v8 }
 0x1b7   : > { %v1456_v12 = vpop.f32.mrf.mxu3  ;;  %v1524_v13 = vpack.c.bf16 %v1520_v11, %v1518_v10 }
 0x1b8   : > { %v1457_v15 = vadd.f32 %v1456_v12, %v1438_v9 }
 0x1b9   : > { %1689 = vmatmul.bf16.gmra.mxu3 %v1524_v13 }
 0x1ba   : > { %v1511_v16 = vmul.f32 0.01, %v1457_v15  ;;  %vm1503_vm0 = vcmp.ge.f32.partialorder %v1457_v15, 0.0 }
 0x1bc   : > { %v1519_v18 = vsel %vm1503_vm0, %v1457_v15, %v1511_v16 }
 0x1bd   : > { %v1523_v19 = vpack.c.bf16 %v1519_v18, %v1517_v17 }
 0x1bf   : > { %1670 = vmatmul.bf16.gmra.mxu2 %v1523_v19 }
 0x22c   : > { %v1685_v20 = vpop.f32.mrf.mxu3 }
 0x232   : > { %v1666_v22 = vpop.f32.mrf.mxu2 }
 0x233   : > { %v1667_v23 = vadd.f32 %v2536_v21, %v1666_v22 }
 0x234   : > { %v1687_v24 = vpop.f32.mrf.mxu3 }
 0x235   : > { %v1686_v25 = vadd.f32 %v1685_v20, %v1667_v23 }
 0x237   : > { %v1699_v26 = vmul.f32 0.01, %v1686_v25  ;;  %vm1695_vm1 = vcmp.ge.f32.partialorder %v1686_v25, 0.0 }
 0x239   : > { %v1703_v29 = vsel %vm1695_vm1, %v1686_v25, %v1699_v26 }
 0x23a   : > { %v1668_v51 = vpop.f32.mrf.mxu2 }
 0x23b   : > { %v1669_v55 = vadd.f32 %v2536_v21, %v1668_v51 }
 0x23c   : > { %v1690_v31 = vpop.f32.mrf.mxu3 }
 0x23d   : > { %v1688_v27 = vadd.f32 %v1687_v24, %v1669_v55 }
 0x23f   : > { %vm1696_vm2 = vcmp.ge.f32.partialorder %v1688_v27, 0.0  ;;  %v1700_v28 = vmul.f32 0.01, %v1688_v27 }
 0x241   : > { %v1704_v30 = vsel %vm1696_vm2, %v1688_v27, %v1700_v28 }
 0x242   : > { %v2519_v37 = vpack.c.bf16 %v1704_v30, %v1703_v29  ;;  %v1671_v38 = vpop.f32.mrf.mxu2 }
 0x243   : > { %v1672_v39 = vadd.f32 %v2536_v21, %v1671_v38 }
 0x244   : > { %2520 = vst [vmem:[%s283_s10] sm:$0xff] %v2519_v37   ;;  %v1692_v32 = vpop.f32.mrf.mxu3 }
 0x245   : > { %v1691_v42 = vadd.f32 %v1690_v31, %v1672_v39 }
 0x247   : > { %v1701_v61 = vmul.f32 0.01, %v1691_v42  ;;  %vm1697_vm3 = vcmp.ge.f32.partialorder %v1691_v42, 0.0 }
 0x249   : > { %v1705_v36 = vsel %vm1697_vm3, %v1691_v42, %v1701_v61 }
 0x24a   : > { %v1673_v46 = vpop.f32.mrf.mxu2 }
 0x24b   : > { %v1674_v47 = vadd.f32 %v2536_v21, %v1673_v46 }
 0x24d   : > { %v1693_v34 = vadd.f32 %v1692_v32, %v1674_v47 }
 0x24f   : > { %vm1698_vm4 = vcmp.ge.f32.partialorder %v1693_v34, 0.0  ;;  %v1702_v35 = vmul.f32 0.01, %v1693_v34 }
 0x251   : > { %v1706_v40 = vsel %vm1698_vm4, %v1693_v34, %v1702_v35 }
 0x252   : > { %v2524_v41 = vpack.c.bf16 %v1706_v40, %v1705_v36 }
 0x254   : > { %2526 = vst [vmem:[%s283_s10 + $0x8] sm:$0xff] %v2524_v41  }
 0x255 PF: > { %s17_s24 = sadd.s32 1, %s2543_s24  }
 0x256   : > { %p14_p4 = scmp.ge.s32.totalorder %s17_s24, 4  }
 0x258   :  { %16 = sbr.rel (!%p14_p4) target bundleno = 1 (0x1), region = 78 }

</bundles_post_ra>
